<compile_context>
chip_gen: v6e
topology: v6e:2x2x1
jax: 0.10.0
libtpu: 0.0.40
codegen_flags: <defaults>
</compile_context>

<pallas_src>
import jax
import jax.numpy as jnp
from jax.experimental import pallas as pl
from jax.experimental.pallas import tpu as pltpu


def vfe_kernel(x_ref, w1t_ref, b1_ref, w2t_ref, b2_ref, o_ref):
    # x_ref:   [P, Cin, Vt] f32   (voxel axis lane-dense)
    # w1t_ref: [Cout, Cin]        b1_ref: [Cout, 1]
    # w2t_ref: [Cout, Cout]       b2_ref: [Cout, 1]
    # o_ref:   [Cout, Vt]
    P = x_ref.shape[0]
    w1t = w1t_ref[...]

    # ---- VFE layer 1 + per-voxel max over points -------------------------------
    # max_p relu(W1 x_p + b1) == relu(max_p(W1 x_p) + b1), so only the raw per-point
    # matmul needs the max-fold.  Each step: one tiny lane-dense MXU matmul and one
    # elementwise max on a [Cout, Vt] accumulator held in vregs.
    m = jnp.dot(w1t, x_ref[0], preferred_element_type=jnp.float32,
                precision=jax.lax.Precision.HIGHEST)
    for p in range(1, P):  # static unroll; P (max_points) is small
        h = jnp.dot(w1t, x_ref[p], preferred_element_type=jnp.float32,
                    precision=jax.lax.Precision.HIGHEST)
        m = jnp.maximum(m, h)
    a1 = jnp.maximum(m + b1_ref[...], 0.0)                    # [Cout, Vt]

    # ---- VFE layer 2 on the aggregated feature ----------------------------------
    # Lane-dense MXU matmul: [Cout, Cout] x [Cout, Vt].
    h2 = jnp.dot(w2t_ref[...], a1, preferred_element_type=jnp.float32,
                 precision=jax.lax.Precision.HIGHEST)
    h2 = jnp.maximum(h2 + b2_ref[...], 0.0)                   # [Cout, Vt]

    # Final torch.max(dim=0) over the single aggregated row is the identity.
    o_ref[...] = h2.astype(o_ref.dtype)


def voxel_feature_extractor(x, w1, b1, w2, b2, *, v_tile=1024):
    """x:  [V, P, Cin] (batch of voxels) or [P, Cin] (single voxel, the original
           module signature).
       w1: [Cin, Cout]; b1: [1, Cout] or [Cout]; w2: [Cout, Cout]; b2: [1, Cout] or [Cout]
       returns: [V, Cout] (or [Cout] for a single voxel) -- VoxelFeatureExtractor
       applied independently to each voxel."""
    squeeze = x.ndim == 2
    if squeeze:
        x = x[None]
    V, P, Cin = x.shape
    Cout = w1.shape[-1]

    # Voxel tile sits on the 128-lane axis -> must be a multiple of 128.
    v_tile = min(int(v_tile), ((V + 127) // 128) * 128)
    v_tile = max(128, (v_tile // 128) * 128)
    n_tiles = (V + v_tile - 1) // v_tile
    Vp = n_tiles * v_tile

    # Lane-dense, f32 stream of x: [P, Cin, Vp].  Padded voxels (if any) just produce
    # relu(bias)-derived rows that are sliced off below.
    xs = jnp.transpose(x.astype(jnp.float32), (1, 2, 0))
    if Vp != V:
        xs = jnp.pad(xs, ((0, 0), (0, 0), (0, Vp - V)))

    w1t = jnp.transpose(w1).astype(jnp.float32)               # [Cout, Cin]
    w2t = jnp.transpose(w2).astype(jnp.float32)               # [Cout, Cout]
    b1c = jnp.reshape(b1, (Cout, 1)).astype(jnp.float32)
    b2c = jnp.reshape(b2, (Cout, 1)).astype(jnp.float32)

    out = pl.pallas_call(
        vfe_kernel,
        out_shape=jax.ShapeDtypeStruct((Cout, Vp), jnp.float32),
        grid=(n_tiles,),
        in_specs=[
            # Streamed voxel tile (voxels on lanes).
            pl.BlockSpec((P, Cin, v_tile), lambda i: (0, 0, i)),
            # Weights / biases: constant index_map -> VMEM-resident across the grid.
            pl.BlockSpec((Cout, Cin), lambda i: (0, 0)),
            pl.BlockSpec((Cout, 1), lambda i: (0, 0)),
            pl.BlockSpec((Cout, Cout), lambda i: (0, 0)),
            pl.BlockSpec((Cout, 1), lambda i: (0, 0)),
        ],
        # Lane-dense output block: (Cout, v_tile).
        out_specs=pl.BlockSpec((Cout, v_tile), lambda i: (0, i)),
        compiler_params=pltpu.CompilerParams(
            # Voxel tiles are independent -> shard across TensorCores on v7x.
            dimension_semantics=("parallel",)),
    )(xs, w1t, b1c, w2t, b2c)

    out = jnp.transpose(out[:, :V])                           # [V, Cout]
    return out[0] if squeeze else out


def reference(x, w1, b1, w2, b2):
    """Pure-JAX mirror of the per-voxel PyTorch forward, all in f32."""
    hp = jax.lax.Precision.HIGHEST
    h1 = jnp.maximum(jnp.einsum("vpk,kc->vpc", x, w1, precision=hp) + b1[None], 0.0)
    a1 = jnp.max(h1, axis=1)                                  # [V, Cout]
    h2 = jnp.maximum(jnp.dot(a1, w2, precision=hp) + b2, 0.0) # [V, Cout]
    return h2   # final torch.max over the single aggregated row is the identity


if __name__ == "__main__":
    num_voxels, max_points, in_channels, out_channels = 300, 16, 4, 32

    key = jax.random.PRNGKey(0)
    kx, kw1, kb1, kw2, kb2 = jax.random.split(key, 5)

    x = jax.random.normal(kx, (num_voxels, max_points, in_channels), dtype=jnp.float32)

    # Deterministic PyTorch-style Linear init: U(-1/sqrt(fan_in), 1/sqrt(fan_in)).
    # nn.Linear stores weight as [out, in]; we pass the [in, out] transpose.
    bnd1 = 1.0 / jnp.sqrt(in_channels)
    w1 = jax.random.uniform(kw1, (in_channels, out_channels),
                            minval=-bnd1, maxval=bnd1, dtype=jnp.float32)
    b1 = jax.random.uniform(kb1, (1, out_channels),
                            minval=-bnd1, maxval=bnd1, dtype=jnp.float32)
    bnd2 = 1.0 / jnp.sqrt(out_channels)
    w2 = jax.random.uniform(kw2, (out_channels, out_channels),
                            minval=-bnd2, maxval=bnd2, dtype=jnp.float32)
    b2 = jax.random.uniform(kb2, (1, out_channels),
                            minval=-bnd2, maxval=bnd2, dtype=jnp.float32)

    # Batched path: small v_tile so the demo exercises a multi-step grid + voxel-pad.
    out = voxel_feature_extractor(x, w1, b1, w2, b2, v_tile=128)
    out = jax.block_until_ready(out)
    ref = reference(x, w1, b1, w2, b2)
    assert out.shape == (num_voxels, out_channels)
    assert jnp.allclose(out, ref, atol=1e-4, rtol=1e-4), float(jnp.max(jnp.abs(out - ref)))

    # Single-voxel path (the original module signature: x is [max_points, in_channels]).
    out_single = voxel_feature_extractor(x[0], w1, b1, w2, b2)
    out_single = jax.block_until_ready(out_single)
    assert out_single.shape == (out_channels,)
    assert jnp.allclose(out_single, out[0], atol=1e-4, rtol=1e-4)

    print("KERNEL_OK")
</pallas_src>

<mosaic_0001>
module attributes {stable_mosaic.version = 11 : i64} {
  func.func @vfe_kernel(%arg0: i32, %arg1: memref<16x4x128xf32, #tpu.memory_space<vmem>>, %arg2: memref<32x4xf32, #tpu.memory_space<vmem>>, %arg3: memref<32x1xf32, #tpu.memory_space<vmem>>, %arg4: memref<32x32xf32, #tpu.memory_space<vmem>>, %arg5: memref<32x1xf32, #tpu.memory_space<vmem>>, %arg6: memref<32x128xf32, #tpu.memory_space<vmem>>) attributes {dimension_semantics = [#tpu.dimension_semantics<parallel>], iteration_bounds = array<i64: 3>, scalar_prefetch = 0 : i64, scratch_operands = 0 : i64, tpu.core_type = #tpu.core_type<tc>, window_params = [{transform_indices = @transform_0, window_bounds = array<i64: 16, 4, 128>}, {pipeline_mode = #tpu.pipeline_mode<synchronous>, transform_indices = @transform_1, window_bounds = array<i64: 32, 4>}, {pipeline_mode = #tpu.pipeline_mode<synchronous>, transform_indices = @transform_2, window_bounds = array<i64: 32, 1>}, {pipeline_mode = #tpu.pipeline_mode<synchronous>, transform_indices = @transform_3, window_bounds = array<i64: 32, 32>}, {pipeline_mode = #tpu.pipeline_mode<synchronous>, transform_indices = @transform_4, window_bounds = array<i64: 32, 1>}, {transform_indices = @transform_5, window_bounds = array<i64: 32, 128>}]} {
    %c0 = arith.constant 0 : index
    %c0_0 = arith.constant 0 : index
    %0 = vector.load %arg2[%c0, %c0_0] : memref<32x4xf32, #tpu.memory_space<vmem>>, vector<32x4xf32>
    %c0_1 = arith.constant 0 : index
    %c0_2 = arith.constant 0 : index
    %c0_3 = arith.constant 0 : index
    %1 = vector.load %arg1[%c0_1, %c0_2, %c0_3] : memref<16x4x128xf32, #tpu.memory_space<vmem>>, vector<1x4x128xf32>
    %2 = vector.shape_cast %1 : vector<1x4x128xf32> to vector<4x128xf32>
    %cst = arith.constant dense<0.000000e+00> : vector<32x128xf32>
    %3 = tpu.matmul %0, %2, %cst {dimension_numbers = #tpu.dot_dimension_numbers<[1], [0], [0], [1], [0, 0, 1, 1], [], []>, precision = #tpu.contract_precision<fp32>} : vector<32x4xf32>, vector<4x128xf32>, vector<32x128xf32> -> vector<32x128xf32>
    %c1 = arith.constant 1 : index
    %c0_4 = arith.constant 0 : index
    %c0_5 = arith.constant 0 : index
    %4 = vector.load %arg1[%c1, %c0_4, %c0_5] : memref<16x4x128xf32, #tpu.memory_space<vmem>>, vector<1x4x128xf32>
    %5 = vector.shape_cast %4 : vector<1x4x128xf32> to vector<4x128xf32>
    %cst_6 = arith.constant dense<0.000000e+00> : vector<32x128xf32>
    %6 = tpu.matmul %0, %5, %cst_6 {dimension_numbers = #tpu.dot_dimension_numbers<[1], [0], [0], [1], [0, 0, 1, 1], [], []>, precision = #tpu.contract_precision<fp32>} : vector<32x4xf32>, vector<4x128xf32>, vector<32x128xf32> -> vector<32x128xf32>
    %7 = arith.maximumf %3, %6 : vector<32x128xf32>
    %c2 = arith.constant 2 : index
    %c0_7 = arith.constant 0 : index
    %c0_8 = arith.constant 0 : index
    %8 = vector.load %arg1[%c2, %c0_7, %c0_8] : memref<16x4x128xf32, #tpu.memory_space<vmem>>, vector<1x4x128xf32>
    %9 = vector.shape_cast %8 : vector<1x4x128xf32> to vector<4x128xf32>
    %cst_9 = arith.constant dense<0.000000e+00> : vector<32x128xf32>
    %10 = tpu.matmul %0, %9, %cst_9 {dimension_numbers = #tpu.dot_dimension_numbers<[1], [0], [0], [1], [0, 0, 1, 1], [], []>, precision = #tpu.contract_precision<fp32>} : vector<32x4xf32>, vector<4x128xf32>, vector<32x128xf32> -> vector<32x128xf32>
    %11 = arith.maximumf %7, %10 : vector<32x128xf32>
    %c3 = arith.constant 3 : index
    %c0_10 = arith.constant 0 : index
    %c0_11 = arith.constant 0 : index
    %12 = vector.load %arg1[%c3, %c0_10, %c0_11] : memref<16x4x128xf32, #tpu.memory_space<vmem>>, vector<1x4x128xf32>
    %13 = vector.shape_cast %12 : vector<1x4x128xf32> to vector<4x128xf32>
    %cst_12 = arith.constant dense<0.000000e+00> : vector<32x128xf32>
    %14 = tpu.matmul %0, %13, %cst_12 {dimension_numbers = #tpu.dot_dimension_numbers<[1], [0], [0], [1], [0, 0, 1, 1], [], []>, precision = #tpu.contract_precision<fp32>} : vector<32x4xf32>, vector<4x128xf32>, vector<32x128xf32> -> vector<32x128xf32>
    %15 = arith.maximumf %11, %14 : vector<32x128xf32>
    %c4 = arith.constant 4 : index
    %c0_13 = arith.constant 0 : index
    %c0_14 = arith.constant 0 : index
    %16 = vector.load %arg1[%c4, %c0_13, %c0_14] : memref<16x4x128xf32, #tpu.memory_space<vmem>>, vector<1x4x128xf32>
    %17 = vector.shape_cast %16 : vector<1x4x128xf32> to vector<4x128xf32>
    %cst_15 = arith.constant dense<0.000000e+00> : vector<32x128xf32>
    %18 = tpu.matmul %0, %17, %cst_15 {dimension_numbers = #tpu.dot_dimension_numbers<[1], [0], [0], [1], [0, 0, 1, 1], [], []>, precision = #tpu.contract_precision<fp32>} : vector<32x4xf32>, vector<4x128xf32>, vector<32x128xf32> -> vector<32x128xf32>
    %19 = arith.maximumf %15, %18 : vector<32x128xf32>
    %c5 = arith.constant 5 : index
    %c0_16 = arith.constant 0 : index
    %c0_17 = arith.constant 0 : index
    %20 = vector.load %arg1[%c5, %c0_16, %c0_17] : memref<16x4x128xf32, #tpu.memory_space<vmem>>, vector<1x4x128xf32>
    %21 = vector.shape_cast %20 : vector<1x4x128xf32> to vector<4x128xf32>
    %cst_18 = arith.constant dense<0.000000e+00> : vector<32x128xf32>
    %22 = tpu.matmul %0, %21, %cst_18 {dimension_numbers = #tpu.dot_dimension_numbers<[1], [0], [0], [1], [0, 0, 1, 1], [], []>, precision = #tpu.contract_precision<fp32>} : vector<32x4xf32>, vector<4x128xf32>, vector<32x128xf32> -> vector<32x128xf32>
    %23 = arith.maximumf %19, %22 : vector<32x128xf32>
    %c6 = arith.constant 6 : index
    %c0_19 = arith.constant 0 : index
    %c0_20 = arith.constant 0 : index
    %24 = vector.load %arg1[%c6, %c0_19, %c0_20] : memref<16x4x128xf32, #tpu.memory_space<vmem>>, vector<1x4x128xf32>
    %25 = vector.shape_cast %24 : vector<1x4x128xf32> to vector<4x128xf32>
    %cst_21 = arith.constant dense<0.000000e+00> : vector<32x128xf32>
    %26 = tpu.matmul %0, %25, %cst_21 {dimension_numbers = #tpu.dot_dimension_numbers<[1], [0], [0], [1], [0, 0, 1, 1], [], []>, precision = #tpu.contract_precision<fp32>} : vector<32x4xf32>, vector<4x128xf32>, vector<32x128xf32> -> vector<32x128xf32>
    %27 = arith.maximumf %23, %26 : vector<32x128xf32>
    %c7 = arith.constant 7 : index
    %c0_22 = arith.constant 0 : index
    %c0_23 = arith.constant 0 : index
    %28 = vector.load %arg1[%c7, %c0_22, %c0_23] : memref<16x4x128xf32, #tpu.memory_space<vmem>>, vector<1x4x128xf32>
    %29 = vector.shape_cast %28 : vector<1x4x128xf32> to vector<4x128xf32>
    %cst_24 = arith.constant dense<0.000000e+00> : vector<32x128xf32>
    %30 = tpu.matmul %0, %29, %cst_24 {dimension_numbers = #tpu.dot_dimension_numbers<[1], [0], [0], [1], [0, 0, 1, 1], [], []>, precision = #tpu.contract_precision<fp32>} : vector<32x4xf32>, vector<4x128xf32>, vector<32x128xf32> -> vector<32x128xf32>
    %31 = arith.maximumf %27, %30 : vector<32x128xf32>
    %c8 = arith.constant 8 : index
    %c0_25 = arith.constant 0 : index
    %c0_26 = arith.constant 0 : index
    %32 = vector.load %arg1[%c8, %c0_25, %c0_26] : memref<16x4x128xf32, #tpu.memory_space<vmem>>, vector<1x4x128xf32>
    %33 = vector.shape_cast %32 : vector<1x4x128xf32> to vector<4x128xf32>
    %cst_27 = arith.constant dense<0.000000e+00> : vector<32x128xf32>
    %34 = tpu.matmul %0, %33, %cst_27 {dimension_numbers = #tpu.dot_dimension_numbers<[1], [0], [0], [1], [0, 0, 1, 1], [], []>, precision = #tpu.contract_precision<fp32>} : vector<32x4xf32>, vector<4x128xf32>, vector<32x128xf32> -> vector<32x128xf32>
    %35 = arith.maximumf %31, %34 : vector<32x128xf32>
    %c9 = arith.constant 9 : index
    %c0_28 = arith.constant 0 : index
    %c0_29 = arith.constant 0 : index
    %36 = vector.load %arg1[%c9, %c0_28, %c0_29] : memref<16x4x128xf32, #tpu.memory_space<vmem>>, vector<1x4x128xf32>
    %37 = vector.shape_cast %36 : vector<1x4x128xf32> to vector<4x128xf32>
    %cst_30 = arith.constant dense<0.000000e+00> : vector<32x128xf32>
    %38 = tpu.matmul %0, %37, %cst_30 {dimension_numbers = #tpu.dot_dimension_numbers<[1], [0], [0], [1], [0, 0, 1, 1], [], []>, precision = #tpu.contract_precision<fp32>} : vector<32x4xf32>, vector<4x128xf32>, vector<32x128xf32> -> vector<32x128xf32>
    %39 = arith.maximumf %35, %38 : vector<32x128xf32>
    %c10 = arith.constant 10 : index
    %c0_31 = arith.constant 0 : index
    %c0_32 = arith.constant 0 : index
    %40 = vector.load %arg1[%c10, %c0_31, %c0_32] : memref<16x4x128xf32, #tpu.memory_space<vmem>>, vector<1x4x128xf32>
    %41 = vector.shape_cast %40 : vector<1x4x128xf32> to vector<4x128xf32>
    %cst_33 = arith.constant dense<0.000000e+00> : vector<32x128xf32>
    %42 = tpu.matmul %0, %41, %cst_33 {dimension_numbers = #tpu.dot_dimension_numbers<[1], [0], [0], [1], [0, 0, 1, 1], [], []>, precision = #tpu.contract_precision<fp32>} : vector<32x4xf32>, vector<4x128xf32>, vector<32x128xf32> -> vector<32x128xf32>
    %43 = arith.maximumf %39, %42 : vector<32x128xf32>
    %c11 = arith.constant 11 : index
    %c0_34 = arith.constant 0 : index
    %c0_35 = arith.constant 0 : index
    %44 = vector.load %arg1[%c11, %c0_34, %c0_35] : memref<16x4x128xf32, #tpu.memory_space<vmem>>, vector<1x4x128xf32>
    %45 = vector.shape_cast %44 : vector<1x4x128xf32> to vector<4x128xf32>
    %cst_36 = arith.constant dense<0.000000e+00> : vector<32x128xf32>
    %46 = tpu.matmul %0, %45, %cst_36 {dimension_numbers = #tpu.dot_dimension_numbers<[1], [0], [0], [1], [0, 0, 1, 1], [], []>, precision = #tpu.contract_precision<fp32>} : vector<32x4xf32>, vector<4x128xf32>, vector<32x128xf32> -> vector<32x128xf32>
    %47 = arith.maximumf %43, %46 : vector<32x128xf32>
    %c12 = arith.constant 12 : index
    %c0_37 = arith.constant 0 : index
    %c0_38 = arith.constant 0 : index
    %48 = vector.load %arg1[%c12, %c0_37, %c0_38] : memref<16x4x128xf32, #tpu.memory_space<vmem>>, vector<1x4x128xf32>
    %49 = vector.shape_cast %48 : vector<1x4x128xf32> to vector<4x128xf32>
    %cst_39 = arith.constant dense<0.000000e+00> : vector<32x128xf32>
    %50 = tpu.matmul %0, %49, %cst_39 {dimension_numbers = #tpu.dot_dimension_numbers<[1], [0], [0], [1], [0, 0, 1, 1], [], []>, precision = #tpu.contract_precision<fp32>} : vector<32x4xf32>, vector<4x128xf32>, vector<32x128xf32> -> vector<32x128xf32>
    %51 = arith.maximumf %47, %50 : vector<32x128xf32>
    %c13 = arith.constant 13 : index
    %c0_40 = arith.constant 0 : index
    %c0_41 = arith.constant 0 : index
    %52 = vector.load %arg1[%c13, %c0_40, %c0_41] : memref<16x4x128xf32, #tpu.memory_space<vmem>>, vector<1x4x128xf32>
    %53 = vector.shape_cast %52 : vector<1x4x128xf32> to vector<4x128xf32>
    %cst_42 = arith.constant dense<0.000000e+00> : vector<32x128xf32>
    %54 = tpu.matmul %0, %53, %cst_42 {dimension_numbers = #tpu.dot_dimension_numbers<[1], [0], [0], [1], [0, 0, 1, 1], [], []>, precision = #tpu.contract_precision<fp32>} : vector<32x4xf32>, vector<4x128xf32>, vector<32x128xf32> -> vector<32x128xf32>
    %55 = arith.maximumf %51, %54 : vector<32x128xf32>
    %c14 = arith.constant 14 : index
    %c0_43 = arith.constant 0 : index
    %c0_44 = arith.constant 0 : index
    %56 = vector.load %arg1[%c14, %c0_43, %c0_44] : memref<16x4x128xf32, #tpu.memory_space<vmem>>, vector<1x4x128xf32>
    %57 = vector.shape_cast %56 : vector<1x4x128xf32> to vector<4x128xf32>
    %cst_45 = arith.constant dense<0.000000e+00> : vector<32x128xf32>
    %58 = tpu.matmul %0, %57, %cst_45 {dimension_numbers = #tpu.dot_dimension_numbers<[1], [0], [0], [1], [0, 0, 1, 1], [], []>, precision = #tpu.contract_precision<fp32>} : vector<32x4xf32>, vector<4x128xf32>, vector<32x128xf32> -> vector<32x128xf32>
    %59 = arith.maximumf %55, %58 : vector<32x128xf32>
    %c15 = arith.constant 15 : index
    %c0_46 = arith.constant 0 : index
    %c0_47 = arith.constant 0 : index
    %60 = vector.load %arg1[%c15, %c0_46, %c0_47] : memref<16x4x128xf32, #tpu.memory_space<vmem>>, vector<1x4x128xf32>
    %61 = vector.shape_cast %60 : vector<1x4x128xf32> to vector<4x128xf32>
    %cst_48 = arith.constant dense<0.000000e+00> : vector<32x128xf32>
    %62 = tpu.matmul %0, %61, %cst_48 {dimension_numbers = #tpu.dot_dimension_numbers<[1], [0], [0], [1], [0, 0, 1, 1], [], []>, precision = #tpu.contract_precision<fp32>} : vector<32x4xf32>, vector<4x128xf32>, vector<32x128xf32> -> vector<32x128xf32>
    %63 = arith.maximumf %59, %62 : vector<32x128xf32>
    %c0_49 = arith.constant 0 : index
    %c0_50 = arith.constant 0 : index
    %64 = vector.load %arg3[%c0_49, %c0_50] : memref<32x1xf32, #tpu.memory_space<vmem>>, vector<32x1xf32>
    %65 = vector.broadcast %64 : vector<32x1xf32> to vector<32x128xf32>
    %66 = arith.addf %63, %65 : vector<32x128xf32>
    %cst_51 = arith.constant 0.000000e+00 : f32
    %67 = vector.broadcast %cst_51 : f32 to vector<32x128xf32>
    %68 = arith.maximumf %66, %67 : vector<32x128xf32>
    %c0_52 = arith.constant 0 : index
    %c0_53 = arith.constant 0 : index
    %69 = vector.load %arg4[%c0_52, %c0_53] : memref<32x32xf32, #tpu.memory_space<vmem>>, vector<32x32xf32>
    %cst_54 = arith.constant dense<0.000000e+00> : vector<32x128xf32>
    %70 = tpu.matmul %69, %68, %cst_54 {dimension_numbers = #tpu.dot_dimension_numbers<[1], [0], [0], [1], [0, 0, 1, 1], [], []>, precision = #tpu.contract_precision<fp32>} : vector<32x32xf32>, vector<32x128xf32>, vector<32x128xf32> -> vector<32x128xf32>
    %c0_55 = arith.constant 0 : index
    %c0_56 = arith.constant 0 : index
    %71 = vector.load %arg5[%c0_55, %c0_56] : memref<32x1xf32, #tpu.memory_space<vmem>>, vector<32x1xf32>
    %72 = vector.broadcast %71 : vector<32x1xf32> to vector<32x128xf32>
    %73 = arith.addf %70, %72 : vector<32x128xf32>
    %cst_57 = arith.constant 0.000000e+00 : f32
    %74 = vector.broadcast %cst_57 : f32 to vector<32x128xf32>
    %75 = arith.maximumf %73, %74 : vector<32x128xf32>
    %c0_58 = arith.constant 0 : index
    %c0_59 = arith.constant 0 : index
    %76 = vector.load %arg6[%c0_58, %c0_59] : memref<32x128xf32, #tpu.memory_space<vmem>>, vector<32x128xf32>
    tpu.vector_store %arg6[%c0_58, %c0_59], %75 {strides = array<i32>} : memref<32x128xf32, #tpu.memory_space<vmem>>, vector<32x128xf32>,
    return
  }
  func.func @transform_0(%arg0: i32) -> (i32, i32, i32) {
    %c0_i32 = arith.constant 0 : i32
    %c0_i32_0 = arith.constant 0 : i32
    %c0_i32_1 = arith.constant 0 : i32
    return %c0_i32, %c0_i32_0, %arg0 : i32, i32, i32
  }
  func.func @transform_1(%arg0: i32) -> (i32, i32) {
    %c0_i32 = arith.constant 0 : i32
    %c0_i32_0 = arith.constant 0 : i32
    %c0_i32_1 = arith.constant 0 : i32
    return %c0_i32, %c0_i32_0 : i32, i32
  }
  func.func @transform_2(%arg0: i32) -> (i32, i32) {
    %c0_i32 = arith.constant 0 : i32
    %c0_i32_0 = arith.constant 0 : i32
    %c0_i32_1 = arith.constant 0 : i32
    return %c0_i32, %c0_i32_0 : i32, i32
  }
  func.func @transform_3(%arg0: i32) -> (i32, i32) {
    %c0_i32 = arith.constant 0 : i32
    %c0_i32_0 = arith.constant 0 : i32
    %c0_i32_1 = arith.constant 0 : i32
    return %c0_i32, %c0_i32_0 : i32, i32
  }
  func.func @transform_4(%arg0: i32) -> (i32, i32) {
    %c0_i32 = arith.constant 0 : i32
    %c0_i32_0 = arith.constant 0 : i32
    %c0_i32_1 = arith.constant 0 : i32
    return %c0_i32, %c0_i32_0 : i32, i32
  }
  func.func @transform_5(%arg0: i32) -> (i32, i32) {
    %c0_i32 = arith.constant 0 : i32
    %c0_i32_0 = arith.constant 0 : i32
    return %c0_i32, %arg0 : i32, i32
  }
}

</mosaic_0001>

<bundles_post_ra>
// kernel: tpu_custom_call.1
= control target key start
LH: loop header
LB: loop body
LE: loop exit
PB: predicated region body
PF: predicated region fallthrough
CT: control target
= control target key end

     0   :  { %10 = vsyncpa [#allocation3], 0  ;;  %s13153_s0 = inlined_call_operand.hbm [shape: f32[16,4,384], index: 0, kind: input, shape index: {}]   ;;  %s13154_s1 = inlined_call_operand.vmem [shape: f32[32,4], index: 1, kind: input, shape index: {}]   ;;  %s13155_s2 = inlined_call_operand.vmem [shape: f32[32,1], index: 2, kind: input, shape index: {}]   ;;  %s13156_s3 = inlined_call_operand.vmem [shape: f32[32,32], index: 3, kind: input, shape index: {}]   ;;  %s13157_s4 = inlined_call_operand.vmem [shape: f32[32,1], index: 4, kind: input, shape index: {}]   ;;  %s13158_s5 = inlined_call_operand.hbm [shape: f32[32,384], index: 5, kind: output, shape index: {}]  }
   0x1   :  { %12 = vsyncpa [#allocation3 + $0x1], 0 }
   0x2   :  { %13 = vsyncpa [#allocation4], 0 }
   0x3   :  { %15 = vsyncpa [#allocation4 + $0x1], 0  ;;  %s11975_s18 = smov 0   ;;  %s11977_s19 = smov 0  }
   0x4   :  { %s11979_s20 = smov 0   ;;  %s11981_s21 = smov 0  }
   0x5 LB: > { %s11996_s22 = sadd.s32 4294967295, %s11934_s21   ;;  %s10380_s23 = sadd.s32 4294967294, %s11934_s21   ;;  %s11934_s21 = sphi %s11981_s21, %s13201_s21   ;;  %s11930_s20 = sphi %s11979_s20, %s13200_s20   ;;  %s11926_s19 = sphi %s11977_s19, %s13199_s19   ;;  %s11922_s18 = sphi %s11975_s18, %s13198_s18  }
   0x6   : > { %s12000_s24 = sadd.s32 1, %s11934_s21   ;;  %s28_s25 = sadd.s32 1, %s11930_s20 }
   0x7   : > { %s25_s26 = ssub.s32 %s11934_s21, %s12000_s24  ;;  %p35_p0 = scmp.ne.s32.totalorder %s11930_s20, %s11926_s19 }
   0x8   : > { %p26_p1 = scmp.eq.s32.totalorder %s25_s26, 0  ;;  %p36_p2 = scmp.eq.s32.totalorder %s11934_s21, 0 }
   0x9   : > { %p41_p3 = scmp.ne.s32.totalorder %s11926_s19, %s11922_s18  ;;  %p42_p4 = scmp.eq.s32.totalorder %s11996_s22, 0 }
   0xa   : > { %s12012_s27 = scalar_select %p26_p1, %s11930_s20, %s28_s25  }
   0xb   : > { %p12014_p5 = por %p36_p2, %p35_p0  ;;  %p12018_p6 = por %p42_p4, %p41_p3 }
   0xc   : > { %p149_p7 = scmp.eq.s32.totalorder %s11996_s22, 2  ;;  %p155_p8 = scmp.eq.s32.totalorder %s10380_s23, 2 }
   0xd   : > { %s13167_s29 = scalar_select %p12018_p6, 1, 0 }
   0xe   : > { %p11799_p9 = scmp.lt.s32.totalorder %s11934_s21, 3  ;;  %p12024_p10 = por %p149_p7, %p35_p0 }
   0xf   : > { %p12028_p11 = por %p155_p8, %p41_p3  ;;  %s187_s7 = sand.u32 1, %s11930_s20  }
  0x10   : > { %s13168_s30 = scalar_select %p12024_p10, 1, 0 }
  0x11   : > { %s13169_s6 = scalar_select %p12028_p11, 1, 0 }
  0x12   : > { %s10384_s8 = sshll.u32 %s11934_s21, 6  ;;  %s10383_s9 = sshll.u32 %s187_s7, 6 }
  0x13   : > { %s12037_s12 = scalar_lea.hbm %s13153_s0, %s10384_s8  ;;  %s191_s13 = scalar_lea.vmem [#allocation2], %s10383_s9 }
  0x14   : > { %s197_s14 = sshll.u32 %s191_s13, 4  ;;  %p12041_p12 = pnand %p11799_p9, %p12014_p5  ;;  %s12045_s14 = int_to_ptr.vmem [resolvable:$true] %s197_s14 }
  0x15   : > { %s12048_s16 = scalar_lea.sflag [#allocation3], %s187_s7  ;;  %s11842_s17 = scalar_lea.hbm %s12037_s12, 1024 }
  0x16   : > { %p11843_p0 = scmp.ne.s32.totalorder %s12037_s12, %s11842_s17  ;;  %p11844_p1 = pneg %p12041_p12 }
  0x17   : > { %s11847_s26 = scalar_lea.hbm %s13153_s0, 3072  ;;  %p11848_p4 = scmp.lt.s32.totalorder %s12037_s12, %s13153_s0 }
  0x18   : > { %p11845_p2 = pnand %p11844_p1, %p11843_p0  ;;  %p11849_p5 = scmp.lt.s32.totalorder %s11847_s26, %s11842_s17 }
  0x1a   : > { %p11846_p3 = pneg %p11845_p2  ;;  %p11850_p7 = por %p11849_p5, %p11848_p4 }
  0x1c   : > { %p11851_p8 = pnand %p11850_p7, %p11846_p3 }
  0x1e   : > { %11854 = shalt.err (!%p11851_p8)
}
  0x1f   : > { %s11855_s7 = scalar_lea.vmem %s12045_s14, 1024  ;;  %s11936_s9 = smov [#allocation2]  }
  0x20   : > { %p11856_p9 = scmp.ne.s32.totalorder %s12045_s14, %s11855_s7  ;;  %s11860_s10 = sshll.u32 %s11936_s9, 4  ;;  %s11861_s10 = int_to_ptr.vmem [resolvable:$false] %s11860_s10 }
  0x21   : > { %s11862_s11 = scalar_lea.vmem %s11861_s10, 2048  ;;  %p11863_p2 = scmp.lt.s32.totalorder %s12045_s14, %s11861_s10 }
  0x22   : > { %p11858_p13 = pnand %p11856_p9, %p11844_p1  ;;  %p11864_p11 = scmp.lt.s32.totalorder %s11862_s11, %s11855_s7 }
  0x24   : > { %p11859_p0 = pneg %p11858_p13  ;;  %p11865_p10 = por %p11864_p11, %p11863_p2 }
  0x26   : > { %p11866_p6 = pnand %p11865_p10, %p11859_p0 }
  0x28   : > { %11869 = shalt.err (!%p11866_p6)
}
  0x29   : > { %s11937_s13 = smov 192   ;;  %s11938_s17 = smov 64  }
  0x2a   : > { %s11939_s23 = smov 4   ;;  %p205_p13 = scmp.lt.s32.totalorder %s11934_s21, 4 }
  0x2b   : > { %11794 = dma.hbm_to_vmem [thread:$0]  (!%p12041_p12), %s12037_s12, 1024, %s12045_s14, %s12048_s16, %s11937_s13, %s11938_s17, %s11939_s23  }
  0x2c   : > { %p13171_p1 = scmp.ge.s32.totalorder %s11934_s21, 1 }
  0x2e   : > { %p206_p3 = pnand %p13171_p1, %p205_p13 }
  0x30   : > { %209 = sbr.rel (%p206_p3) target bundleno = 912 (0x390), region = 40 }
  0x35   : > { %s12073_s25 = sand.u32 1, %s11926_s19   ;;  %p13172_p6 = scmp.ne.s32.totalorder %s13167_s29, 0 }
  0x36   : > { %s10386_s26 = sshll.u32 %s12073_s25, 6  ;;  %s212_s28 = scalar_lea.sflag [#allocation3], %s12073_s25 }
  0x37   : > { %s12077_s8 = scalar_lea.vmem [#allocation2], %s10386_s26 }
  0x38   : > { %11913 = dma.done.wait (%p13172_p6), %s212_s28, 1024  }
  0x39   : > { %11915 = vsyncadd (%p13172_p6), %s212_s28, 4294966272  ;;  %vm260_vm0 = vcmask 1043456   ;;  %vm247_vm1 = vcmask 31744   ;;  %v246_v0 = vld [vmem:[%s12077_s8] sm:$0xf]  ;;  %v243_v2 = vld [vmem:[%s13154_s1 + $0x8] sm:$0xff] }
  0x3a   : > { %v242_v1 = vld [vmem:[%s13154_s1] sm:$0xff]  ;;  %v262_v3 = vsel %vm260_vm0, %v246_v0, 0  ;;  %v252_v5 = vsel %vm247_vm1, %v243_v2, 0  ;;  %v244_v6 = vld [vmem:[%s13154_s1 + $0x10] sm:$0xff]  ;;  %v245_v7 = vld [vmem:[%s13154_s1 + $0x18] sm:$0xff]  ;;  %vm9659_vm2 = vcmask 261120  }
  0x3b   : > { %v249_v4 = vsel %vm247_vm1, %v242_v1, 0  ;;  %v295_v8 = vand.u32 4294901760, %v262_v3  ;;  %v12099_v10 = vand.u32 4294901760, %v252_v5  ;;  %v255_v11 = vsel %vm247_vm1, %v244_v6, 0  ;;  %v10388_v12 = vld [vmem:[%s12077_s8 + $0x4] sm:$0xf] }
  0x3c   : > { %v12097_v9 = vand.u32 4294901760, %v249_v4  ;;  %v12102_v13 = vand.u32 4294901760, %v255_v11  ;;  %v258_v14 = vsel %vm247_vm1, %v245_v7, 0  ;;  %v842_v15 = vsel %vm260_vm0, %v10388_v12, 0  ;;  %v10389_v42 = vld [vmem:[%s12077_s8 + $0x8] sm:$0xf] }
  0x3d   : > { %10935 = vmatprep.subr.mxu0 %v295_v8  ;;  %v402_v17 = vsub.f32 %v262_v3, %v295_v8  ;;  %v12109_v18 = vsub.f32 %v252_v5, %v12099_v10  ;;  %v12112_v19 = vand.u32 4294901760, %v258_v14  ;;  %v12117_v21 = vand.u32 4294901760, %v842_v15  ;;  %v10390_v49 = vld [vmem:[%s12077_s8 + $0xc] sm:$0xf]  ;;  %v10391_v56 = vld [vmem:[%s12077_s8 + $0x10] sm:$0xf] }
  0x3e   : > { %v12106_v16 = vsub.f32 %v249_v4, %v12097_v9  ;;  %10945 = vmatprep.mubr.f32.mxu1 %v12097_v9  ;;  %10936 = vmatpush3.msra.mxu0 %v295_v8  ;;  %v12115_v20 = vsub.f32 %v255_v11, %v12102_v13  ;;  %v1426_v43 = vsel %vm260_vm0, %v10389_v42, 0  ;;  %v2010_v50 = vsel %vm260_vm0, %v10390_v49, 0  ;;  %v10392_v63 = vld [vmem:[%s12077_s8 + $0x14] sm:$0xf]  ;;  %v10393_v6 = vld [vmem:[%s12077_s8 + $0x18] sm:$0xf] }
  0x3f   : > { %v403_v23 = vand.u32 4294901760, %v402_v17  ;;  %v12123_v24 = vand.u32 4294901760, %v12109_v18  ;;  %10951 = vmatprep.subr.mxu0 %v402_v17  ;;  %v12126_v25 = vsub.f32 %v258_v14, %v12112_v19  ;;  %v982_v32 = vsub.f32 %v842_v15, %v12117_v21  ;;  %s10387_s15 = sshll.u32 %s12073_s25, 5  ;;  %s10404_s29 = sshll.u32 %s11996_s22, 7 }
  0x40   : > { %v12120_v22 = vand.u32 4294901760, %v12106_v16  ;;  %v12129_v26 = vand.u32 4294901760, %v12115_v20  ;;  %v12172_v44 = vand.u32 4294901760, %v1426_v43  ;;  %v12207_v51 = vand.u32 4294901760, %v2010_v50  ;;  %s241_s16 = scalar_lea.vmem [#allocation5], %s10387_s15  ;;  %s13111_s11 = scalar_lea.hbm %s13158_s5, %s10404_s29 }
  0x41   : > { %v404_v28 = vsub.f32 %v402_v17, %v403_v23  ;;  %v343_v29 = vsub.f32 %v12109_v18, %v12123_v24  ;;  %v12136_v30 = vand.u32 4294901760, %v12126_v25  ;;  %v983_v39 = vand.u32 4294901760, %v982_v32  ;;  %s10307_s7 = sshll.u32 %s241_s16, 4  ;;  %s10295_s13 = scalar_lea.sflag [#allocation4], %s12073_s25  ;;  %s13106_s7 = int_to_ptr.vmem [resolvable:$true] %s10307_s7 }
  0x42   : > { %v333_v27 = vsub.f32 %v12106_v16, %v12120_v22  ;;  %v353_v31 = vsub.f32 %v12115_v20, %v12129_v26  ;;  %v1566_v45 = vsub.f32 %v1426_v43, %v12172_v44  ;;  %v2150_v52 = vsub.f32 %v2010_v50, %v12207_v51  ;;  %v10396_v43 = vld [vmem:[%s12077_s8 + $0x24] sm:$0xf]  ;;  %s11870_s17 = scalar_lea.vmem %s13106_s7, 512  ;;  %p13196_p11 = scmp.ne.s32.totalorder %s13168_s30, 0 }
  0x43   : > { %v405_v34 = vand.u32 4294901760, %v404_v28  ;;  %v12143_v35 = vand.u32 4294901760, %v343_v29  ;;  %v363_v36 = vsub.f32 %v12126_v25, %v12136_v30  ;;  %v984_v40 = vsub.f32 %v982_v32, %v983_v39  ;;  %p11871_p10 = scmp.ne.s32.totalorder %s13106_s7, %s11870_s17  ;;  %s11941_s22 = smov [#allocation5]  }
  0x44   : > { %v12141_v33 = vand.u32 4294901760, %v333_v27  ;;  %v12147_v37 = vand.u32 4294901760, %v353_v31  ;;  %v1567_v46 = vand.u32 4294901760, %v1566_v45  ;;  %v2151_v53 = vand.u32 4294901760, %v2150_v52  ;;  %s11874_s23 = sshll.u32 %s11941_s22, 4  ;;  %s11875_s23 = int_to_ptr.vmem [resolvable:$false] %s11874_s23 }
  0x45   : > { %10943 = vmatprep.subr.mxu1 %v405_v34  ;;  %v12151_v38 = vand.u32 4294901760, %v363_v36  ;;  %v985_v41 = vand.u32 4294901760, %v984_v40  ;;  %v2594_v57 = vsel %vm260_vm0, %v10391_v56, 0  ;;  %v3178_v0 = vsel %vm260_vm0, %v10392_v63, 0  ;;  %p11872_p12 = pnand %p11871_p10, %p13196_p11  ;;  %s11876_s26 = scalar_lea.vmem %s11875_s23, 1024 }
  0x46   : > { %10937 = vmatprep.mubr.f32.mxu0 %v12141_v33  ;;  %10944 = vmatpush3.msra.mxu1 %v405_v34  ;;  %v1568_v47 = vsub.f32 %v1566_v45, %v1567_v46  ;;  %v2152_v54 = vsub.f32 %v2150_v52, %v2151_v53  ;;  %v12242_v58 = vand.u32 4294901760, %v2594_v57  ;;  %v12277_v1 = vand.u32 4294901760, %v3178_v0  ;;  %p11877_p5 = scmp.lt.s32.totalorder %s13106_s7, %s11875_s23  ;;  %p11878_p7 = scmp.lt.s32.totalorder %s11876_s26, %s11870_s17 }
  0x47   : > { %10938 = vmatmul.mubr.f32.vlgmr.msra.gmra.mxu0 %v12143_v35  ;;  %10946 = vmatmul.mubr.f32.vlgmr.msra.gmra.mxu1 %v12099_v10  ;;  %v3762_v7 = vsel %vm260_vm0, %v10393_v6, 0  ;;  %p11873_p4 = pneg %p11872_p12 }
  0x48   : > { %10952 = vmatpush3.msra.mxu0 %v402_v17  ;;  %10959 = vmatprep.subr.mxu1 %v295_v8  ;;  %v1569_v48 = vand.u32 4294901760, %v1568_v47  ;;  %v2153_v55 = vand.u32 4294901760, %v2152_v54  ;;  %v2734_v59 = vsub.f32 %v2594_v57, %v12242_v58  ;;  %v3318_v2 = vsub.f32 %v3178_v0, %v12277_v1  ;;  %v10394_v17 = vld [vmem:[%s12077_s8 + $0x1c] sm:$0xf]  ;;  %p11879_p8 = por %p11878_p7, %p11877_p5 }
  0x49   : > { %10940 = vmatprep.mubr.f32.mxu0 %v12147_v37  ;;  %10960 = vmatpush3.msra.mxu1 %v295_v8 }
  0x4a   : > { %10948 = vmatprep.mubr.f32.mxu1 %v12102_v13  ;;  %10967 = vmatprep.subr.mxu0 %v403_v23  ;;  %v2735_v60 = vand.u32 4294901760, %v2734_v59  ;;  %v3319_v3 = vand.u32 4294901760, %v3318_v2  ;;  %p11880_p9 = pnand %p11879_p8, %p11873_p4 }
  0x4b   : > { %10941 = vmatmul.mubr.f32.gmra.mxu0 %v12151_v38  ;;  %10949 = vmatmul.mubr.f32.gmra.mxu1 %v12112_v19 }
  0x4c   : > { %10953 = vmatprep.mubr.f32.mxu0 %v12106_v16  ;;  %10961 = vmatprep.mubr.f32.mxu1 %v12120_v22  ;;  %v2736_v61 = vsub.f32 %v2734_v59, %v2735_v60  ;;  %v3320_v4 = vsub.f32 %v3318_v2, %v3319_v3 }
  0x4d   : > { %10975 = vmatprep.subr.mxu1 %v295_v8 }
  0x4e   : > { %v2737_v62 = vand.u32 4294901760, %v2736_v61  ;;  %v3321_v5 = vand.u32 4294901760, %v3320_v4 }
  0x4f   : > { %10954 = vmatmul.mubr.f32.vlgmr.msra.gmra.mxu0 %v12109_v18  ;;  %10962 = vmatmul.mubr.f32.vlgmr.msra.gmra.mxu1 %v12123_v24 }
  0x50   : > { %10968 = vmatpush3.msra.mxu0 %v403_v23  ;;  %10956 = vmatprep.mubr.f32.mxu0 %v12115_v20 }
  0x51   : > { %10976 = vmatpush3.msra.mxu1 %v295_v8  ;;  %10964 = vmatprep.mubr.f32.mxu1 %v12129_v26  ;;  %v12312_v8 = vand.u32 4294901760, %v3762_v7 }
  0x52   : > { %10983 = vmatprep.subr.mxu0 %v12117_v21  ;;  %10991 = vmatprep.subr.mxu1 %v985_v41 }
  0x53   : > { %10957 = vmatmul.mubr.f32.gmra.mxu0 %v12126_v25  ;;  %10965 = vmatmul.mubr.f32.gmra.mxu1 %v12136_v30  ;;  %v3902_v11 = vsub.f32 %v3762_v7, %v12312_v8 }
  0x54   : > { %10969 = vmatprep.mubr.f32.mxu0 %v12097_v9  ;;  %10977 = vmatprep.mubr.f32.mxu1 %v12097_v9 }
  0x55   : > { %v3903_v12 = vand.u32 4294901760, %v3902_v11 }
  0x57   : > { %10970 = vmatmul.mubr.f32.vlgmr.msra.gmra.mxu0 %v12099_v10  ;;  %10978 = vmatmul.mubr.f32.vlgmr.msra.gmra.mxu1 %v12099_v10  ;;  %v3904_v14 = vsub.f32 %v3902_v11, %v3903_v12 }
  0x58   : > { %10984 = vmatpush3.msra.mxu0 %v12117_v21  ;;  %10972 = vmatprep.mubr.f32.mxu0 %v12102_v13 }
  0x59   : > { %10992 = vmatpush3.msra.mxu1 %v985_v41  ;;  %10980 = vmatprep.mubr.f32.mxu1 %v12102_v13  ;;  %v3905_v15 = vand.u32 4294901760, %v3904_v14 }
  0x5a   : > { %10999 = vmatprep.subr.mxu0 %v982_v32  ;;  %11007 = vmatprep.subr.mxu1 %v12117_v21 }
  0x5b   : > { %10973 = vmatmul.mubr.f32.gmra.mxu0 %v12112_v19  ;;  %10981 = vmatmul.mubr.f32.gmra.mxu1 %v12112_v19 }
  0x5c   : > { %10985 = vmatprep.mubr.f32.mxu0 %v12141_v33  ;;  %10993 = vmatprep.mubr.f32.mxu1 %v12097_v9 }
  0x5f   : > { %10986 = vmatmul.mubr.f32.vlgmr.msra.gmra.mxu0 %v12143_v35  ;;  %10994 = vmatmul.mubr.f32.vlgmr.msra.gmra.mxu1 %v12099_v10 }
  0x60   : > { %11000 = vmatpush3.msra.mxu0 %v982_v32  ;;  %10988 = vmatprep.mubr.f32.mxu0 %v12147_v37  ;;  %v10395_v32 = vld [vmem:[%s12077_s8 + $0x20] sm:$0xf] }
  0x61   : > { %11008 = vmatpush3.msra.mxu1 %v12117_v21  ;;  %10996 = vmatprep.mubr.f32.mxu1 %v12102_v13  ;;  %v4930_v34 = vsel %vm260_vm0, %v10395_v32, 0 }
  0x62   : > { %11015 = vmatprep.subr.mxu0 %v983_v39  ;;  %11023 = vmatprep.subr.mxu1 %v12117_v21  ;;  %v12382_v36 = vand.u32 4294901760, %v4930_v34 }
  0x63   : > { %10989 = vmatmul.mubr.f32.gmra.mxu0 %v12151_v38  ;;  %10997 = vmatmul.mubr.f32.gmra.mxu1 %v12112_v19 }
  0x64   : > { %11001 = vmatprep.mubr.f32.mxu0 %v12106_v16  ;;  %11009 = vmatprep.mubr.f32.mxu1 %v12120_v22 }
  0x67   : > { %11002 = vmatmul.mubr.f32.vlgmr.msra.gmra.mxu0 %v12109_v18  ;;  %11010 = vmatmul.mubr.f32.vlgmr.msra.gmra.mxu1 %v12123_v24 }
  0x68   : > { %11016 = vmatpush3.msra.mxu0 %v983_v39  ;;  %11004 = vmatprep.mubr.f32.mxu0 %v12115_v20  ;;  %v5070_v39 = vsub.f32 %v4930_v34, %v12382_v36 }
  0x69   : > { %11024 = vmatpush3.msra.mxu1 %v12117_v21  ;;  %11012 = vmatprep.mubr.f32.mxu1 %v12129_v26  ;;  %v4346_v21 = vsel %vm260_vm0, %v10394_v17, 0 }
  0x6a   : > { %11031 = vmatprep.subr.mxu0 %v12172_v44  ;;  %11039 = vmatprep.subr.mxu1 %v1569_v48  ;;  %v12347_v23 = vand.u32 4294901760, %v4346_v21  ;;  %v12395_v40 = vand.u32 4294901760, %v5070_v39 }
  0x6b   : > { %11005 = vmatmul.mubr.f32.gmra.mxu0 %v12126_v25  ;;  %11013 = vmatmul.mubr.f32.gmra.mxu1 %v12136_v30 }
  0x6c   : > { %11017 = vmatprep.mubr.f32.mxu0 %v12097_v9  ;;  %11025 = vmatprep.mubr.f32.mxu1 %v12097_v9  ;;  %v4486_v27 = vsub.f32 %v4346_v21, %v12347_v23  ;;  %v5072_v41 = vsub.f32 %v5070_v39, %v12395_v40 }
  0x6e   : > { %v4487_v28 = vand.u32 4294901760, %v4486_v27  ;;  %v5073_v42 = vand.u32 4294901760, %v5072_v41 }
  0x6f   : > { %11018 = vmatmul.mubr.f32.vlgmr.msra.gmra.mxu0 %v12099_v10  ;;  %11026 = vmatmul.mubr.f32.vlgmr.msra.gmra.mxu1 %v12099_v10 }
  0x70   : > { %11032 = vmatpush3.msra.mxu0 %v12172_v44  ;;  %11020 = vmatprep.mubr.f32.mxu0 %v12102_v13  ;;  %v4488_v29 = vsub.f32 %v4486_v27, %v4487_v28 }
  0x71   : > { %11040 = vmatpush3.msra.mxu1 %v1569_v48  ;;  %11028 = vmatprep.mubr.f32.mxu1 %v12102_v13 }
  0x72   : > { %11047 = vmatprep.subr.mxu0 %v1566_v45  ;;  %11055 = vmatprep.subr.mxu1 %v12172_v44  ;;  %v4489_v31 = vand.u32 4294901760, %v4488_v29 }
  0x73   : > { %11021 = vmatmul.mubr.f32.gmra.mxu0 %v12112_v19  ;;  %11029 = vmatmul.mubr.f32.gmra.mxu1 %v12112_v19 }
  0x74   : > { %11033 = vmatprep.mubr.f32.mxu0 %v12141_v33  ;;  %11041 = vmatprep.mubr.f32.mxu1 %v12097_v9 }
  0x77   : > { %11034 = vmatmul.mubr.f32.vlgmr.msra.gmra.mxu0 %v12143_v35  ;;  %11042 = vmatmul.mubr.f32.vlgmr.msra.gmra.mxu1 %v12099_v10 }
  0x78   : > { %11048 = vmatpush3.msra.mxu0 %v1566_v45  ;;  %11036 = vmatprep.mubr.f32.mxu0 %v12147_v37 }
  0x79   : > { %11056 = vmatpush3.msra.mxu1 %v12172_v44  ;;  %11044 = vmatprep.mubr.f32.mxu1 %v12102_v13 }
  0x7a   : > { %11063 = vmatprep.subr.mxu0 %v1567_v46  ;;  %11071 = vmatprep.subr.mxu1 %v12172_v44 }
  0x7b   : > { %11037 = vmatmul.mubr.f32.gmra.mxu0 %v12151_v38  ;;  %11045 = vmatmul.mubr.f32.gmra.mxu1 %v12112_v19 }
  0x7c   : > { %11049 = vmatprep.mubr.f32.mxu0 %v12106_v16  ;;  %11057 = vmatprep.mubr.f32.mxu1 %v12120_v22 }
  0x7f   : > { %11050 = vmatmul.mubr.f32.vlgmr.msra.gmra.mxu0 %v12109_v18  ;;  %11058 = vmatmul.mubr.f32.vlgmr.msra.gmra.mxu1 %v12123_v24 }
  0x80   : > { %11064 = vmatpush3.msra.mxu0 %v1567_v46  ;;  %11052 = vmatprep.mubr.f32.mxu0 %v12115_v20 }
  0x81   : > { %11072 = vmatpush3.msra.mxu1 %v12172_v44  ;;  %11060 = vmatprep.mubr.f32.mxu1 %v12129_v26  ;;  %v5514_v44 = vsel %vm260_vm0, %v10396_v43, 0 }
  0x82   : > { %11079 = vmatprep.subr.mxu0 %v12207_v51  ;;  %11087 = vmatprep.subr.mxu1 %v2153_v55  ;;  %v12420_v45 = vand.u32 4294901760, %v5514_v44 }
  0x83   : > { %11053 = vmatmul.mubr.f32.gmra.mxu0 %v12126_v25  ;;  %11061 = vmatmul.mubr.f32.gmra.mxu1 %v12136_v30 }
  0x84   : > { %11065 = vmatprep.mubr.f32.mxu0 %v12097_v9  ;;  %11073 = vmatprep.mubr.f32.mxu1 %v12097_v9  ;;  %v12429_v46 = vsub.f32 %v5514_v44, %v12420_v45 }
  0x86   : > { %v12436_v48 = vand.u32 4294901760, %v12429_v46 }
  0x87   : > { %11066 = vmatmul.mubr.f32.vlgmr.msra.gmra.mxu0 %v12099_v10  ;;  %11074 = vmatmul.mubr.f32.vlgmr.msra.gmra.mxu1 %v12099_v10 }
  0x88   : > { %11080 = vmatpush3.msra.mxu0 %v12207_v51  ;;  %11068 = vmatprep.mubr.f32.mxu0 %v12102_v13 }
  0x89   : > { %11088 = vmatpush3.msra.mxu1 %v2153_v55  ;;  %11076 = vmatprep.mubr.f32.mxu1 %v12102_v13  ;;  %v5656_v55 = vsub.f32 %v12429_v46, %v12436_v48 }
  0x8a   : > { %11095 = vmatprep.subr.mxu0 %v2150_v52  ;;  %11103 = vmatprep.subr.mxu1 %v12207_v51 }
  0x8b   : > { %11069 = vmatmul.mubr.f32.gmra.mxu0 %v12112_v19  ;;  %11077 = vmatmul.mubr.f32.gmra.mxu1 %v12112_v19 }
  0x8c   : > { %11081 = vmatprep.mubr.f32.mxu0 %v12141_v33  ;;  %11089 = vmatprep.mubr.f32.mxu1 %v12097_v9 }
  0x8f   : > { %11082 = vmatmul.mubr.f32.vlgmr.msra.gmra.mxu0 %v12143_v35  ;;  %11090 = vmatmul.mubr.f32.vlgmr.msra.gmra.mxu1 %v12099_v10 }
  0x90   : > { %11096 = vmatpush3.msra.mxu0 %v2150_v52  ;;  %11084 = vmatprep.mubr.f32.mxu0 %v12147_v37 }
  0x91   : > { %11104 = vmatpush3.msra.mxu1 %v12207_v51  ;;  %11092 = vmatprep.mubr.f32.mxu1 %v12102_v13 }
  0x92   : > { %11111 = vmatprep.subr.mxu0 %v2151_v53  ;;  %11119 = vmatprep.subr.mxu1 %v12207_v51 }
  0x93   : > { %11085 = vmatmul.mubr.f32.gmra.mxu0 %v12151_v38  ;;  %11093 = vmatmul.mubr.f32.gmra.mxu1 %v12112_v19 }
  0x94   : > { %11097 = vmatprep.mubr.f32.mxu0 %v12106_v16  ;;  %11105 = vmatprep.mubr.f32.mxu1 %v12120_v22 }
  0x97   : > { %11098 = vmatmul.mubr.f32.vlgmr.msra.gmra.mxu0 %v12109_v18  ;;  %11106 = vmatmul.mubr.f32.vlgmr.msra.gmra.mxu1 %v12123_v24 }
  0x98   : > { %11112 = vmatpush3.msra.mxu0 %v2151_v53  ;;  %11100 = vmatprep.mubr.f32.mxu0 %v12115_v20 }
  0x99   : > { %11120 = vmatpush3.msra.mxu1 %v12207_v51  ;;  %11108 = vmatprep.mubr.f32.mxu1 %v12129_v26 }
  0x9a   : > { %11127 = vmatprep.subr.mxu0 %v12242_v58  ;;  %11135 = vmatprep.subr.mxu1 %v2737_v62 }
  0x9b   : > { %11101 = vmatmul.mubr.f32.gmra.mxu0 %v12126_v25  ;;  %11109 = vmatmul.mubr.f32.gmra.mxu1 %v12136_v30 }
  0x9c   : > { %11113 = vmatprep.mubr.f32.mxu0 %v12097_v9  ;;  %11121 = vmatprep.mubr.f32.mxu1 %v12097_v9 }
  0x9f   : > { %11114 = vmatmul.mubr.f32.vlgmr.msra.gmra.mxu0 %v12099_v10  ;;  %11122 = vmatmul.mubr.f32.vlgmr.msra.gmra.mxu1 %v12099_v10 }
  0xa0   : > { %11128 = vmatpush3.msra.mxu0 %v12242_v58  ;;  %11116 = vmatprep.mubr.f32.mxu0 %v12102_v13 }
  0xa1   : > { %11136 = vmatpush3.msra.mxu1 %v2737_v62  ;;  %11124 = vmatprep.mubr.f32.mxu1 %v12102_v13  ;;  %v5657_v62 = vand.u32 4294901760, %v5656_v55 }
  0xa2   : > { %11143 = vmatprep.subr.mxu0 %v2734_v59  ;;  %11151 = vmatprep.subr.mxu1 %v12242_v58 }
  0xa3   : > { %11117 = vmatmul.mubr.f32.gmra.mxu0 %v12112_v19  ;;  %11125 = vmatmul.mubr.f32.gmra.mxu1 %v12112_v19 }
  0xa4   : > { %11129 = vmatprep.mubr.f32.mxu0 %v12141_v33  ;;  %11137 = vmatprep.mubr.f32.mxu1 %v12097_v9 }
  0xa7   : > { %11130 = vmatmul.mubr.f32.vlgmr.msra.gmra.mxu0 %v12143_v35  ;;  %11138 = vmatmul.mubr.f32.vlgmr.msra.gmra.mxu1 %v12099_v10 }
  0xa8   : > { %11144 = vmatpush3.msra.mxu0 %v2734_v59  ;;  %11132 = vmatprep.mubr.f32.mxu0 %v12147_v37 }
  0xa9   : > { %11152 = vmatpush3.msra.mxu1 %v12242_v58  ;;  %11140 = vmatprep.mubr.f32.mxu1 %v12102_v13 }
  0xaa   : > { %11159 = vmatprep.subr.mxu0 %v2735_v60  ;;  %11167 = vmatprep.subr.mxu1 %v12242_v58 }
  0xab   : > { %11133 = vmatmul.mubr.f32.gmra.mxu0 %v12151_v38  ;;  %11141 = vmatmul.mubr.f32.gmra.mxu1 %v12112_v19 }
  0xac   : > { %11145 = vmatprep.mubr.f32.mxu0 %v12106_v16  ;;  %11153 = vmatprep.mubr.f32.mxu1 %v12120_v22 }
  0xaf   : > { %11146 = vmatmul.mubr.f32.vlgmr.msra.gmra.mxu0 %v12109_v18  ;;  %11154 = vmatmul.mubr.f32.vlgmr.msra.gmra.mxu1 %v12123_v24 }
  0xb0   : > { %11160 = vmatpush3.msra.mxu0 %v2735_v60  ;;  %11148 = vmatprep.mubr.f32.mxu0 %v12115_v20 }
  0xb1   : > { %11168 = vmatpush3.msra.mxu1 %v12242_v58  ;;  %11156 = vmatprep.mubr.f32.mxu1 %v12129_v26 }
  0xb2   : > { %11175 = vmatprep.subr.mxu0 %v12277_v1  ;;  %11183 = vmatprep.subr.mxu1 %v3321_v5 }
  0xb3   : > { %11149 = vmatmul.mubr.f32.gmra.mxu0 %v12126_v25  ;;  %11157 = vmatmul.mubr.f32.gmra.mxu1 %v12136_v30 }
  0xb4   : > { %11161 = vmatprep.mubr.f32.mxu0 %v12097_v9  ;;  %11169 = vmatprep.mubr.f32.mxu1 %v12097_v9 }
  0xb7   : > { %11162 = vmatmul.mubr.f32.vlgmr.msra.gmra.mxu0 %v12099_v10  ;;  %11170 = vmatmul.mubr.f32.vlgmr.msra.gmra.mxu1 %v12099_v10 }
  0xb8   : > { %11176 = vmatpush3.msra.mxu0 %v12277_v1  ;;  %11164 = vmatprep.mubr.f32.mxu0 %v12102_v13 }
  0xb9   : > { %11184 = vmatpush3.msra.mxu1 %v3321_v5  ;;  %11172 = vmatprep.mubr.f32.mxu1 %v12102_v13 }
  0xba   : > { %11191 = vmatprep.subr.mxu0 %v3318_v2  ;;  %11199 = vmatprep.subr.mxu1 %v12277_v1 }
  0xbb   : > { %11165 = vmatmul.mubr.f32.gmra.mxu0 %v12112_v19  ;;  %11173 = vmatmul.mubr.f32.gmra.mxu1 %v12112_v19 }
  0xbc   : > { %11177 = vmatprep.mubr.f32.mxu0 %v12141_v33  ;;  %11185 = vmatprep.mubr.f32.mxu1 %v12097_v9 }
  0xbf   : > { %11178 = vmatmul.mubr.f32.vlgmr.msra.gmra.mxu0 %v12143_v35  ;;  %11186 = vmatmul.mubr.f32.vlgmr.msra.gmra.mxu1 %v12099_v10 }
  0xc0   : > { %11192 = vmatpush3.msra.mxu0 %v3318_v2  ;;  %11180 = vmatprep.mubr.f32.mxu0 %v12147_v37  ;;  %v10397_v2 = vld [vmem:[%s12077_s8 + $0x28] sm:$0xf] }
  0xc1   : > { %11200 = vmatpush3.msra.mxu1 %v12277_v1  ;;  %11188 = vmatprep.mubr.f32.mxu1 %v12102_v13 }
  0xc2   : > { %11207 = vmatprep.subr.mxu0 %v3319_v3  ;;  %11215 = vmatprep.subr.mxu1 %v12277_v1 }
  0xc3   : > { %11181 = vmatmul.mubr.f32.gmra.mxu0 %v12151_v38  ;;  %11189 = vmatmul.mubr.f32.gmra.mxu1 %v12112_v19 }
  0xc4   : > { %11193 = vmatprep.mubr.f32.mxu0 %v12106_v16  ;;  %11201 = vmatprep.mubr.f32.mxu1 %v12120_v22 }
  0xc7   : > { %11194 = vmatmul.mubr.f32.vlgmr.msra.gmra.mxu0 %v12109_v18  ;;  %11202 = vmatmul.mubr.f32.vlgmr.msra.gmra.mxu1 %v12123_v24 }
  0xc8   : > { %11208 = vmatpush3.msra.mxu0 %v3319_v3  ;;  %11196 = vmatprep.mubr.f32.mxu0 %v12115_v20 }
  0xc9   : > { %11216 = vmatpush3.msra.mxu1 %v12277_v1  ;;  %11204 = vmatprep.mubr.f32.mxu1 %v12129_v26 }
  0xca   : > { %11223 = vmatprep.subr.mxu0 %v12312_v8  ;;  %11231 = vmatprep.subr.mxu1 %v3905_v15 }
  0xcb   : > { %11197 = vmatmul.mubr.f32.gmra.mxu0 %v12126_v25  ;;  %11205 = vmatmul.mubr.f32.gmra.mxu1 %v12136_v30 }
  0xcc   : > { %11209 = vmatprep.mubr.f32.mxu0 %v12097_v9  ;;  %11217 = vmatprep.mubr.f32.mxu1 %v12097_v9 }
  0xcf   : > { %11210 = vmatmul.mubr.f32.vlgmr.msra.gmra.mxu0 %v12099_v10  ;;  %11218 = vmatmul.mubr.f32.vlgmr.msra.gmra.mxu1 %v12099_v10 }
  0xd0   : > { %11224 = vmatpush3.msra.mxu0 %v12312_v8  ;;  %11212 = vmatprep.mubr.f32.mxu0 %v12102_v13 }
  0xd1   : > { %11232 = vmatpush3.msra.mxu1 %v3905_v15  ;;  %11220 = vmatprep.mubr.f32.mxu1 %v12102_v13 }
  0xd2   : > { %11239 = vmatprep.subr.mxu0 %v3902_v11  ;;  %11247 = vmatprep.subr.mxu1 %v12312_v8 }
  0xd3   : > { %11213 = vmatmul.mubr.f32.gmra.mxu0 %v12112_v19  ;;  %11221 = vmatmul.mubr.f32.gmra.mxu1 %v12112_v19 }
  0xd4   : > { %11225 = vmatprep.mubr.f32.mxu0 %v12141_v33  ;;  %11233 = vmatprep.mubr.f32.mxu1 %v12097_v9 }
  0xd7   : > { %11226 = vmatmul.mubr.f32.vlgmr.msra.gmra.mxu0 %v12143_v35  ;;  %11234 = vmatmul.mubr.f32.vlgmr.msra.gmra.mxu1 %v12099_v10 }
  0xd8   : > { %11240 = vmatpush3.msra.mxu0 %v3902_v11  ;;  %11228 = vmatprep.mubr.f32.mxu0 %v12147_v37 }
  0xd9   : > { %11248 = vmatpush3.msra.mxu1 %v12312_v8  ;;  %11236 = vmatprep.mubr.f32.mxu1 %v12102_v13 }
  0xda   : > { %11255 = vmatprep.subr.mxu0 %v3903_v12  ;;  %11263 = vmatprep.subr.mxu1 %v12312_v8 }
  0xdb   : > { %11229 = vmatmul.mubr.f32.gmra.mxu0 %v12151_v38  ;;  %11237 = vmatmul.mubr.f32.gmra.mxu1 %v12112_v19 }
  0xdc   : > { %11241 = vmatprep.mubr.f32.mxu0 %v12106_v16  ;;  %11249 = vmatprep.mubr.f32.mxu1 %v12120_v22 }
  0xdf   : > { %11242 = vmatmul.mubr.f32.vlgmr.msra.gmra.mxu0 %v12109_v18  ;;  %11250 = vmatmul.mubr.f32.vlgmr.msra.gmra.mxu1 %v12123_v24 }
  0xe0   : > { %11256 = vmatpush3.msra.mxu0 %v3903_v12  ;;  %11244 = vmatprep.mubr.f32.mxu0 %v12115_v20  ;;  %v6098_v12 = vsel %vm260_vm0, %v10397_v2, 0 }
  0xe1   : > { %11264 = vmatpush3.msra.mxu1 %v12312_v8  ;;  %11252 = vmatprep.mubr.f32.mxu1 %v12129_v26 }
  0xe2   : > { %11271 = vmatprep.subr.mxu0 %v12347_v23  ;;  %11279 = vmatprep.subr.mxu1 %v4489_v31 }
  0xe3   : > { %11245 = vmatmul.mubr.f32.gmra.mxu0 %v12126_v25  ;;  %11253 = vmatmul.mubr.f32.gmra.mxu1 %v12136_v30 }
  0xe4   : > { %11257 = vmatprep.mubr.f32.mxu0 %v12097_v9  ;;  %11265 = vmatprep.mubr.f32.mxu1 %v12097_v9 }
  0xe7   : > { %11258 = vmatmul.mubr.f32.vlgmr.msra.gmra.mxu0 %v12099_v10  ;;  %11266 = vmatmul.mubr.f32.vlgmr.msra.gmra.mxu1 %v12099_v10 }
  0xe8   : > { %11272 = vmatpush3.msra.mxu0 %v12347_v23  ;;  %11260 = vmatprep.mubr.f32.mxu0 %v12102_v13 }
  0xe9   : > { %11280 = vmatpush3.msra.mxu1 %v4489_v31  ;;  %11268 = vmatprep.mubr.f32.mxu1 %v12102_v13 }
  0xea   : > { %11287 = vmatprep.subr.mxu0 %v4486_v27  ;;  %11295 = vmatprep.subr.mxu1 %v12347_v23 }
  0xeb   : > { %11261 = vmatmul.mubr.f32.gmra.mxu0 %v12112_v19  ;;  %11269 = vmatmul.mubr.f32.gmra.mxu1 %v12112_v19 }
  0xec   : > { %11273 = vmatprep.mubr.f32.mxu0 %v12141_v33  ;;  %11281 = vmatprep.mubr.f32.mxu1 %v12097_v9 }
  0xef   : > { %11274 = vmatmul.mubr.f32.vlgmr.msra.gmra.mxu0 %v12143_v35  ;;  %11282 = vmatmul.mubr.f32.vlgmr.msra.gmra.mxu1 %v12099_v10 }
  0xf0   : > { %11288 = vmatpush3.msra.mxu0 %v4486_v27  ;;  %11276 = vmatprep.mubr.f32.mxu0 %v12147_v37  ;;  %v12464_v27 = vand.u32 4294901760, %v6098_v12 }
  0xf1   : > { %11296 = vmatpush3.msra.mxu1 %v12347_v23  ;;  %11284 = vmatprep.mubr.f32.mxu1 %v12102_v13 }
  0xf2   : > { %11303 = vmatprep.subr.mxu0 %v4487_v28  ;;  %11311 = vmatprep.subr.mxu1 %v12347_v23  ;;  %v12476_v41 = vsub.f32 %v6098_v12, %v12464_v27 }
  0xf3   : > { %11277 = vmatmul.mubr.f32.gmra.mxu0 %v12151_v38  ;;  %11285 = vmatmul.mubr.f32.gmra.mxu1 %v12112_v19 }
  0xf4   : > { %11289 = vmatprep.mubr.f32.mxu0 %v12106_v16  ;;  %11297 = vmatprep.mubr.f32.mxu1 %v12120_v22 }
  0xf7   : > { %11290 = vmatmul.mubr.f32.vlgmr.msra.gmra.mxu0 %v12109_v18  ;;  %11298 = vmatmul.mubr.f32.vlgmr.msra.gmra.mxu1 %v12123_v24 }
  0xf8   : > { %11304 = vmatpush3.msra.mxu0 %v4487_v28  ;;  %11292 = vmatprep.mubr.f32.mxu0 %v12115_v20 }
  0xf9   : > { %11312 = vmatpush3.msra.mxu1 %v12347_v23  ;;  %11300 = vmatprep.mubr.f32.mxu1 %v12129_v26 }
  0xfa   : > { %11319 = vmatprep.subr.mxu0 %v12382_v36  ;;  %11327 = vmatprep.subr.mxu1 %v5073_v42 }
  0xfb   : > { %11293 = vmatmul.mubr.f32.gmra.mxu0 %v12126_v25  ;;  %11301 = vmatmul.mubr.f32.gmra.mxu1 %v12136_v30 }
  0xfc   : > { %11305 = vmatprep.mubr.f32.mxu0 %v12097_v9  ;;  %11313 = vmatprep.mubr.f32.mxu1 %v12097_v9 }
  0xff   : > { %11306 = vmatmul.mubr.f32.vlgmr.msra.gmra.mxu0 %v12099_v10  ;;  %11314 = vmatmul.mubr.f32.vlgmr.msra.gmra.mxu1 %v12099_v10 }
 0x100   : > { %11320 = vmatpush3.msra.mxu0 %v12382_v36  ;;  %11308 = vmatprep.mubr.f32.mxu0 %v12102_v13 }
 0x101   : > { %11328 = vmatpush3.msra.mxu1 %v5073_v42  ;;  %11316 = vmatprep.mubr.f32.mxu1 %v12102_v13 }
 0x102   : > { %11335 = vmatprep.subr.mxu0 %v5070_v39  ;;  %11343 = vmatprep.subr.mxu1 %v12382_v36 }
 0x103   : > { %11309 = vmatmul.mubr.f32.gmra.mxu0 %v12112_v19  ;;  %11317 = vmatmul.mubr.f32.gmra.mxu1 %v12112_v19 }
 0x104   : > { %11321 = vmatprep.mubr.f32.mxu0 %v12141_v33  ;;  %11329 = vmatprep.mubr.f32.mxu1 %v12097_v9 }
 0x107   : > { %v10939_v47 = vpop.f32.mrf.mxu0  ;;  %11322 = vmatmul.mubr.f32.vlgmr.msra.gmra.mxu0 %v12143_v35  ;;  %v10947_v49 = vpop.f32.mrf.mxu1  ;;  %11330 = vmatmul.mubr.f32.vlgmr.msra.gmra.mxu1 %v12099_v10 }
 0x108   : > { %11336 = vmatpush3.msra.mxu0 %v5070_v39  ;;  %v449_v50 = vadd.f32 %v10947_v49, %v10939_v47  ;;  %11324 = vmatprep.mubr.f32.mxu0 %v12147_v37 }
 0x109   : > { %v336_v51 = vpop.f32.mrf.mxu0  ;;  %11344 = vmatpush3.msra.mxu1 %v12382_v36  ;;  %v442_v52 = vpop.f32.mrf.mxu1  ;;  %11332 = vmatprep.mubr.f32.mxu1 %v12102_v13 }
 0x10a   : > { %11351 = vmatprep.subr.mxu0 %v12395_v40  ;;  %v443_v53 = vadd.f32 %v442_v52, %v336_v51  ;;  %11359 = vmatprep.subr.mxu1 %v12382_v36 }
 0x10b   : > { %v10942_v54 = vpop.f32.mrf.mxu0  ;;  %11325 = vmatmul.mubr.f32.gmra.mxu0 %v12151_v38  ;;  %v10950_v56 = vpop.f32.mrf.mxu1  ;;  %11333 = vmatmul.mubr.f32.gmra.mxu1 %v12112_v19 }
 0x10c   : > { %11337 = vmatprep.mubr.f32.mxu0 %v12106_v16  ;;  %v461_v57 = vadd.f32 %v10950_v56, %v10942_v54  ;;  %11345 = vmatprep.mubr.f32.mxu1 %v12120_v22 }
 0x10d   : > { %v356_v58 = vpop.f32.mrf.mxu0  ;;  %v454_v59 = vpop.f32.mrf.mxu1 }
 0x10e   : > { %v455_v60 = vadd.f32 %v454_v59, %v356_v58 }
 0x10f   : > { %v10955_v61 = vpop.f32.mrf.mxu0  ;;  %11338 = vmatmul.mubr.f32.vlgmr.msra.gmra.mxu0 %v12109_v18  ;;  %v10963_v0 = vpop.f32.mrf.mxu1  ;;  %11346 = vmatmul.mubr.f32.vlgmr.msra.gmra.mxu1 %v12123_v24 }
 0x110   : > { %v542_v63 = vadd.f32 %v10955_v61, %v449_v50  ;;  %11352 = vmatpush3.msra.mxu0 %v12395_v40  ;;  %11340 = vmatprep.mubr.f32.mxu0 %v12115_v20 }
 0x111   : > { %v534_v1 = vpop.f32.mrf.mxu0  ;;  %11360 = vmatpush3.msra.mxu1 %v12382_v36  ;;  %v629_v5 = vpop.f32.mrf.mxu1  ;;  %11348 = vmatprep.mubr.f32.mxu1 %v12129_v26 }
 0x112   : > { %v638_v3 = vadd.f32 %v10963_v0, %v542_v63  ;;  %v535_v4 = vadd.f32 %v534_v1, %v443_v53  ;;  %11367 = vmatprep.subr.mxu0 %v12420_v45  ;;  %11375 = vmatprep.subr.mxu1 %v5657_v62  ;;  %v12487_v53 = vand.u32 4294901760, %v12476_v41 }
 0x113   : > { %v10958_v6 = vpop.f32.mrf.mxu0  ;;  %11341 = vmatmul.mubr.f32.gmra.mxu0 %v12126_v25  ;;  %v10966_v11 = vpop.f32.mrf.mxu1  ;;  %11349 = vmatmul.mubr.f32.gmra.mxu1 %v12136_v30 }
 0x114   : > { %v630_v7 = vadd.f32 %v629_v5, %v535_v4  ;;  %v556_v8 = vadd.f32 %v10958_v6, %v461_v57  ;;  %11353 = vmatprep.mubr.f32.mxu0 %v12097_v9  ;;  %11361 = vmatprep.mubr.f32.mxu1 %v12097_v9 }
 0x115   : > { %v548_v14 = vpop.f32.mrf.mxu0  ;;  %v645_v21 = vpop.f32.mrf.mxu1 }
 0x116   : > { %v654_v15 = vadd.f32 %v10966_v11, %v556_v8  ;;  %v549_v17 = vadd.f32 %v548_v14, %v455_v60 }
 0x117   : > { %v10971_v23 = vpop.f32.mrf.mxu0  ;;  %11354 = vmatmul.mubr.f32.vlgmr.msra.gmra.mxu0 %v12099_v10  ;;  %v10979_v31 = vpop.f32.mrf.mxu1  ;;  %11362 = vmatmul.mubr.f32.vlgmr.msra.gmra.mxu1 %v12099_v10 }
 0x118   : > { %v646_v28 = vadd.f32 %v645_v21, %v549_v17  ;;  %v734_v29 = vadd.f32 %v10971_v23, %v638_v3  ;;  %11368 = vmatpush3.msra.mxu0 %v12420_v45  ;;  %11356 = vmatprep.mubr.f32.mxu0 %v12102_v13 }
 0x119   : > { %v727_v32 = vpop.f32.mrf.mxu0  ;;  %11376 = vmatpush3.msra.mxu1 %v5657_v62  ;;  %v817_v39 = vpop.f32.mrf.mxu1  ;;  %11364 = vmatprep.mubr.f32.mxu1 %v12102_v13 }
 0x11a   : > { %v12469_v34 = vadd.f32 %v10979_v31, %v734_v29  ;;  %v728_v36 = vadd.f32 %v727_v32, %v630_v7  ;;  %11383 = vmatprep.subr.mxu0 %v12429_v46  ;;  %11391 = vmatprep.subr.mxu1 %v12420_v45  ;;  %v10398_v7 = vld [vmem:[%s12077_s8 + $0x2c] sm:$0xf] }
 0x11b   : > { %v10974_v40 = vpop.f32.mrf.mxu0  ;;  %11357 = vmatmul.mubr.f32.gmra.mxu0 %v12112_v19  ;;  %v10982_v44 = vpop.f32.mrf.mxu1  ;;  %11365 = vmatmul.mubr.f32.gmra.mxu1 %v12112_v19 }
 0x11c   : > { %v12478_v42 = vadd.f32 %v817_v39, %v728_v36  ;;  %v746_v43 = vadd.f32 %v10974_v40, %v654_v15  ;;  %11369 = vmatprep.mubr.f32.mxu0 %v12141_v33  ;;  %11377 = vmatprep.mubr.f32.mxu1 %v12097_v9 }
 0x11d   : > { %v739_v47 = vpop.f32.mrf.mxu0  ;;  %v829_v51 = vpop.f32.mrf.mxu1 }
 0x11e   : > { %v12483_v49 = vadd.f32 %v10982_v44, %v746_v43  ;;  %v740_v50 = vadd.f32 %v739_v47, %v646_v28 }
 0x11f   : > { %v10987_v52 = vpop.f32.mrf.mxu0  ;;  %11370 = vmatmul.mubr.f32.vlgmr.msra.gmra.mxu0 %v12143_v35  ;;  %v10995_v55 = vpop.f32.mrf.mxu1  ;;  %11378 = vmatmul.mubr.f32.vlgmr.msra.gmra.mxu1 %v12099_v10 }
 0x120   : > { %v12489_v54 = vadd.f32 %v829_v51, %v740_v50  ;;  %11384 = vmatpush3.msra.mxu0 %v12429_v46  ;;  %v1029_v56 = vadd.f32 %v10995_v55, %v10987_v52  ;;  %11372 = vmatprep.mubr.f32.mxu0 %v12147_v37  ;;  %v6240_v46 = vsub.f32 %v12476_v41, %v12487_v53 }
 0x121   : > { %v916_v57 = vpop.f32.mrf.mxu0  ;;  %11392 = vmatpush3.msra.mxu1 %v12420_v45  ;;  %v1022_v58 = vpop.f32.mrf.mxu1  ;;  %11380 = vmatprep.mubr.f32.mxu1 %v12102_v13 }
 0x122   : > { %11399 = vmatprep.subr.mxu0 %v12436_v48  ;;  %v1023_v59 = vadd.f32 %v1022_v58, %v916_v57  ;;  %11407 = vmatprep.subr.mxu1 %v12420_v45  ;;  %v6241_v3 = vand.u32 4294901760, %v6240_v46 }
 0x123   : > { %v10990_v60 = vpop.f32.mrf.mxu0  ;;  %11373 = vmatmul.mubr.f32.gmra.mxu0 %v12151_v38  ;;  %v10998_v61 = vpop.f32.mrf.mxu1  ;;  %11381 = vmatmul.mubr.f32.gmra.mxu1 %v12112_v19 }
 0x124   : > { %11385 = vmatprep.mubr.f32.mxu0 %v12106_v16  ;;  %v1041_v62 = vadd.f32 %v10998_v61, %v10990_v60  ;;  %11393 = vmatprep.mubr.f32.mxu1 %v12120_v22 }
 0x125   : > { %v936_v63 = vpop.f32.mrf.mxu0  ;;  %v1034_v0 = vpop.f32.mrf.mxu1 }
 0x126   : > { %v1035_v1 = vadd.f32 %v1034_v0, %v936_v63 }
 0x127   : > { %v11003_v2 = vpop.f32.mrf.mxu0  ;;  %11386 = vmatmul.mubr.f32.vlgmr.msra.gmra.mxu0 %v12109_v18  ;;  %v11011_v5 = vpop.f32.mrf.mxu1  ;;  %11394 = vmatmul.mubr.f32.vlgmr.msra.gmra.mxu1 %v12123_v24 }
 0x128   : > { %v1122_v4 = vadd.f32 %v11003_v2, %v1029_v56  ;;  %11400 = vmatpush3.msra.mxu0 %v12436_v48  ;;  %11388 = vmatprep.mubr.f32.mxu0 %v12115_v20 }
 0x129   : > { %v1114_v6 = vpop.f32.mrf.mxu0  ;;  %11408 = vmatpush3.msra.mxu1 %v12420_v45  ;;  %v1209_v12 = vpop.f32.mrf.mxu1  ;;  %11396 = vmatprep.mubr.f32.mxu1 %v12129_v26  ;;  %v6682_v45 = vsel %vm260_vm0, %v10398_v7, 0 }
 0x12a   : > { %v1218_v8 = vadd.f32 %v11011_v5, %v1122_v4  ;;  %v1115_v11 = vadd.f32 %v1114_v6, %v1023_v59  ;;  %11415 = vmatprep.subr.mxu0 %v12464_v27  ;;  %11423 = vmatprep.subr.mxu1 %v6241_v3  ;;  %v12518_v32 = vand.u32 4294901760, %v6682_v45 }
 0x12b   : > { %v11006_v14 = vpop.f32.mrf.mxu0  ;;  %11389 = vmatmul.mubr.f32.gmra.mxu0 %v12126_v25  ;;  %v11014_v48 = vpop.f32.mrf.mxu1  ;;  %11397 = vmatmul.mubr.f32.gmra.mxu1 %v12136_v30 }
 0x12c   : > { %v1210_v15 = vadd.f32 %v1209_v12, %v1115_v11  ;;  %v1136_v17 = vadd.f32 %v11006_v14, %v1041_v62  ;;  %11401 = vmatprep.mubr.f32.mxu0 %v12097_v9  ;;  %11409 = vmatprep.mubr.f32.mxu1 %v12097_v9  ;;  %v12530_v52 = vsub.f32 %v6682_v45, %v12518_v32 }
 0x12d   : > { %v1128_v21 = vpop.f32.mrf.mxu0  ;;  %v1225_v29 = vpop.f32.mrf.mxu1 }
 0x12e   : > { %v1234_v23 = vadd.f32 %v11014_v48, %v1136_v17  ;;  %v1129_v28 = vadd.f32 %v1128_v21, %v1035_v1  ;;  %v12545_v0 = vand.u32 4294901760, %v12530_v52 }
 0x12f   : > { %v11019_v31 = vpop.f32.mrf.mxu0  ;;  %11402 = vmatmul.mubr.f32.vlgmr.msra.gmra.mxu0 %v12099_v10  ;;  %v11027_v40 = vpop.f32.mrf.mxu1  ;;  %11410 = vmatmul.mubr.f32.vlgmr.msra.gmra.mxu1 %v12099_v10 }
 0x130   : > { %v1226_v36 = vadd.f32 %v1225_v29, %v1129_v28  ;;  %v1314_v39 = vadd.f32 %v11019_v31, %v1218_v8  ;;  %11416 = vmatpush3.msra.mxu0 %v12464_v27  ;;  %11404 = vmatprep.mubr.f32.mxu0 %v12102_v13  ;;  %v10399_v31 = vld [vmem:[%s12077_s8 + $0x30] sm:$0xf] }
 0x131   : > { %v1307_v43 = vpop.f32.mrf.mxu0  ;;  %11424 = vmatpush3.msra.mxu1 %v6241_v3  ;;  %v1397_v50 = vpop.f32.mrf.mxu1  ;;  %11412 = vmatprep.mubr.f32.mxu1 %v12102_v13 }
 0x132   : > { %v12523_v44 = vadd.f32 %v11027_v40, %v1314_v39  ;;  %v1308_v47 = vadd.f32 %v1307_v43, %v1210_v15  ;;  %11431 = vmatprep.subr.mxu0 %v12476_v41  ;;  %11439 = vmatprep.subr.mxu1 %v12464_v27 }
 0x133   : > { %v11022_v51 = vpop.f32.mrf.mxu0  ;;  %11405 = vmatmul.mubr.f32.gmra.mxu0 %v12112_v19  ;;  %v11030_v58 = vpop.f32.mrf.mxu1  ;;  %11413 = vmatmul.mubr.f32.gmra.mxu1 %v12112_v19 }
 0x134   : > { %v1420_v55 = vmax.f32 %v12469_v34, %v12523_v44  ;;  %v12534_v56 = vadd.f32 %v1397_v50, %v1308_v47  ;;  %v1326_v57 = vadd.f32 %v11022_v51, %v1234_v23  ;;  %11417 = vmatprep.mubr.f32.mxu0 %v12141_v33  ;;  %11425 = vmatprep.mubr.f32.mxu1 %v12097_v9 }
 0x135   : > { %v1319_v59 = vpop.f32.mrf.mxu0  ;;  %v1409_v62 = vpop.f32.mrf.mxu1 }
 0x136   : > { %v1419_v60 = vmax.f32 %v12478_v42, %v12534_v56  ;;  %v12541_v46 = vadd.f32 %v11030_v58, %v1326_v57  ;;  %v1320_v61 = vadd.f32 %v1319_v59, %v1226_v36 }
 0x137   : > { %v11035_v63 = vpop.f32.mrf.mxu0  ;;  %11418 = vmatmul.mubr.f32.vlgmr.msra.gmra.mxu0 %v12143_v35  ;;  %v11043_v3 = vpop.f32.mrf.mxu1  ;;  %11426 = vmatmul.mubr.f32.vlgmr.msra.gmra.mxu1 %v12099_v10 }
 0x138   : > { %v1422_v1 = vmax.f32 %v12483_v49, %v12541_v46  ;;  %v12549_v2 = vadd.f32 %v1409_v62, %v1320_v61  ;;  %11432 = vmatpush3.msra.mxu0 %v12476_v41  ;;  %v1613_v4 = vadd.f32 %v11043_v3, %v11035_v63  ;;  %11420 = vmatprep.mubr.f32.mxu0 %v12147_v37 }
 0x139   : > { %v1500_v5 = vpop.f32.mrf.mxu0  ;;  %11440 = vmatpush3.msra.mxu1 %v12464_v27  ;;  %v1606_v7 = vpop.f32.mrf.mxu1  ;;  %11428 = vmatprep.mubr.f32.mxu1 %v12102_v13  ;;  %v6824_v41 = vsub.f32 %v12530_v52, %v12545_v0 }
 0x13a   : > { %v1421_v6 = vmax.f32 %v12489_v54, %v12549_v2  ;;  %11447 = vmatprep.subr.mxu0 %v12487_v53  ;;  %v1607_v8 = vadd.f32 %v1606_v7, %v1500_v5  ;;  %11455 = vmatprep.subr.mxu1 %v12464_v27 }
 0x13b   : > { %v11038_v11 = vpop.f32.mrf.mxu0  ;;  %11421 = vmatmul.mubr.f32.gmra.mxu0 %v12151_v38  ;;  %v11046_v12 = vpop.f32.mrf.mxu1  ;;  %11429 = vmatmul.mubr.f32.gmra.mxu1 %v12112_v19  ;;  %v6825_v21 = vand.u32 4294901760, %v6824_v41 }
 0x13c   : > { %11433 = vmatprep.mubr.f32.mxu0 %v12106_v16  ;;  %v1625_v14 = vadd.f32 %v11046_v12, %v11038_v11  ;;  %11441 = vmatprep.mubr.f32.mxu1 %v12120_v22 }
 0x13d   : > { %v1520_v15 = vpop.f32.mrf.mxu0  ;;  %v1618_v17 = vpop.f32.mrf.mxu1 }
 0x13e   : > { %v1619_v48 = vadd.f32 %v1618_v17, %v1520_v15 }
 0x13f   : > { %v11051_v45 = vpop.f32.mrf.mxu0  ;;  %11434 = vmatmul.mubr.f32.vlgmr.msra.gmra.mxu0 %v12109_v18  ;;  %v11059_v28 = vpop.f32.mrf.mxu1  ;;  %11442 = vmatmul.mubr.f32.vlgmr.msra.gmra.mxu1 %v12123_v24 }
 0x140   : > { %v1706_v23 = vadd.f32 %v11051_v45, %v1613_v4  ;;  %11448 = vmatpush3.msra.mxu0 %v12487_v53  ;;  %11436 = vmatprep.mubr.f32.mxu0 %v12115_v20 }
 0x141   : > { %v1698_v29 = vpop.f32.mrf.mxu0  ;;  %11456 = vmatpush3.msra.mxu1 %v12464_v27  ;;  %v1793_v40 = vpop.f32.mrf.mxu1  ;;  %11444 = vmatprep.mubr.f32.mxu1 %v12129_v26  ;;  %v7266_v27 = vsel %vm260_vm0, %v10399_v31, 0 }
 0x142   : > { %v1802_v36 = vadd.f32 %v11059_v28, %v1706_v23  ;;  %v1699_v39 = vadd.f32 %v1698_v29, %v1607_v8  ;;  %11463 = vmatprep.subr.mxu0 %v12518_v32  ;;  %11471 = vmatprep.subr.mxu1 %v6825_v21  ;;  %v12580_v62 = vand.u32 4294901760, %v7266_v27 }
 0x143   : > { %v11054_v43 = vpop.f32.mrf.mxu0  ;;  %11437 = vmatmul.mubr.f32.gmra.mxu0 %v12126_v25  ;;  %v11062_v53 = vpop.f32.mrf.mxu1  ;;  %11445 = vmatmul.mubr.f32.gmra.mxu1 %v12136_v30 }
 0x144   : > { %v1794_v47 = vadd.f32 %v1793_v40, %v1699_v39  ;;  %v1720_v50 = vadd.f32 %v11054_v43, %v1625_v14  ;;  %11449 = vmatprep.mubr.f32.mxu0 %v12097_v9  ;;  %11457 = vmatprep.mubr.f32.mxu1 %v12097_v9  ;;  %v12590_v12 = vsub.f32 %v7266_v27, %v12580_v62 }
 0x145   : > { %v1712_v51 = vpop.f32.mrf.mxu0  ;;  %v1809_v59 = vpop.f32.mrf.mxu1 }
 0x146   : > { %v1818_v57 = vadd.f32 %v11062_v53, %v1720_v50  ;;  %v1713_v58 = vadd.f32 %v1712_v51, %v1619_v48  ;;  %v10400_v51 = vld [vmem:[%s12077_s8 + $0x34] sm:$0xf] }
 0x147   : > { %v11067_v61 = vpop.f32.mrf.mxu0  ;;  %11450 = vmatmul.mubr.f32.vlgmr.msra.gmra.mxu0 %v12099_v10  ;;  %v11075_v4 = vpop.f32.mrf.mxu1  ;;  %11458 = vmatmul.mubr.f32.vlgmr.msra.gmra.mxu1 %v12099_v10 }
 0x148   : > { %v1810_v63 = vadd.f32 %v1809_v59, %v1713_v58  ;;  %v1898_v3 = vadd.f32 %v11067_v61, %v1802_v36  ;;  %11464 = vmatpush3.msra.mxu0 %v12518_v32  ;;  %11452 = vmatprep.mubr.f32.mxu0 %v12102_v13 }
 0x149   : > { %v1891_v5 = vpop.f32.mrf.mxu0  ;;  %11472 = vmatpush3.msra.mxu1 %v6825_v21  ;;  %v1981_v11 = vpop.f32.mrf.mxu1  ;;  %11460 = vmatprep.mubr.f32.mxu1 %v12102_v13 }
 0x14a   : > { %v1988_v7 = vadd.f32 %v11075_v4, %v1898_v3  ;;  %v1892_v8 = vadd.f32 %v1891_v5, %v1794_v47  ;;  %11479 = vmatprep.subr.mxu0 %v12530_v52  ;;  %11487 = vmatprep.subr.mxu1 %v12518_v32 }
 0x14b   : > { %v11070_v41 = vpop.f32.mrf.mxu0  ;;  %11453 = vmatmul.mubr.f32.gmra.mxu0 %v12112_v19  ;;  %v11078_v48 = vpop.f32.mrf.mxu1  ;;  %11461 = vmatmul.mubr.f32.gmra.mxu1 %v12112_v19 }
 0x14c   : > { %v12595_v14 = vmax.f32 %v1420_v55, %v1988_v7  ;;  %v1982_v15 = vadd.f32 %v1981_v11, %v1892_v8  ;;  %v1910_v17 = vadd.f32 %v11070_v41, %v1818_v57  ;;  %11465 = vmatprep.mubr.f32.mxu0 %v12141_v33  ;;  %11473 = vmatprep.mubr.f32.mxu1 %v12097_v9  ;;  %v12607_v55 = vand.u32 4294901760, %v12590_v12 }
 0x14d   : > { %v1903_v45 = vpop.f32.mrf.mxu0  ;;  %v1993_v34 = vpop.f32.mrf.mxu1 }
 0x14e   : > { %v12603_v21 = vmax.f32 %v1419_v60, %v1982_v15  ;;  %v2000_v23 = vadd.f32 %v11078_v48, %v1910_v17  ;;  %v1904_v28 = vadd.f32 %v1903_v45, %v1810_v63 }
 0x14f   : > { %v11083_v44 = vpop.f32.mrf.mxu0  ;;  %11466 = vmatmul.mubr.f32.vlgmr.msra.gmra.mxu0 %v12143_v35  ;;  %v11091_v36 = vpop.f32.mrf.mxu1  ;;  %11474 = vmatmul.mubr.f32.vlgmr.msra.gmra.mxu1 %v12099_v10 }
 0x150   : > { %v12612_v29 = vmax.f32 %v1422_v1, %v2000_v23  ;;  %v1994_v31 = vadd.f32 %v1993_v34, %v1904_v28  ;;  %11480 = vmatpush3.msra.mxu0 %v12530_v52  ;;  %v2197_v42 = vadd.f32 %v11091_v36, %v11083_v44  ;;  %11468 = vmatprep.mubr.f32.mxu0 %v12147_v37 }
 0x151   : > { %v2084_v56 = vpop.f32.mrf.mxu0  ;;  %11488 = vmatpush3.msra.mxu1 %v12518_v32  ;;  %v2190_v49 = vpop.f32.mrf.mxu1  ;;  %11476 = vmatprep.mubr.f32.mxu1 %v12102_v13  ;;  %v7408_v52 = vsub.f32 %v12590_v12, %v12607_v55 }
 0x152   : > { %v12621_v60 = vmax.f32 %v1421_v6, %v1994_v31  ;;  %11495 = vmatprep.subr.mxu0 %v12545_v0  ;;  %v2191_v46 = vadd.f32 %v2190_v49, %v2084_v56  ;;  %11503 = vmatprep.subr.mxu1 %v12518_v32 }
 0x153   : > { %v11086_v1 = vpop.f32.mrf.mxu0  ;;  %11469 = vmatmul.mubr.f32.gmra.mxu0 %v12151_v38  ;;  %v11094_v39 = vpop.f32.mrf.mxu1  ;;  %11477 = vmatmul.mubr.f32.gmra.mxu1 %v12112_v19  ;;  %v7409_v47 = vand.u32 4294901760, %v7408_v52 }
 0x154   : > { %11481 = vmatprep.mubr.f32.mxu0 %v12106_v16  ;;  %v2209_v54 = vadd.f32 %v11094_v39, %v11086_v1  ;;  %11489 = vmatprep.mubr.f32.mxu1 %v12120_v22 }
 0x155   : > { %v2104_v2 = vpop.f32.mrf.mxu0  ;;  %v2202_v6 = vpop.f32.mrf.mxu1 }
 0x156   : > { %v2203_v40 = vadd.f32 %v2202_v6, %v2104_v2 }
 0x157   : > { %v11099_v43 = vpop.f32.mrf.mxu0  ;;  %11482 = vmatmul.mubr.f32.vlgmr.msra.gmra.mxu0 %v12109_v18  ;;  %v11107_v53 = vpop.f32.mrf.mxu1  ;;  %11490 = vmatmul.mubr.f32.vlgmr.msra.gmra.mxu1 %v12123_v24 }
 0x158   : > { %v2290_v50 = vadd.f32 %v11099_v43, %v2197_v42  ;;  %11496 = vmatpush3.msra.mxu0 %v12545_v0  ;;  %11484 = vmatprep.mubr.f32.mxu0 %v12115_v20 }
 0x159   : > { %v2282_v27 = vpop.f32.mrf.mxu0  ;;  %11504 = vmatpush3.msra.mxu1 %v12518_v32  ;;  %v2377_v59 = vpop.f32.mrf.mxu1  ;;  %11492 = vmatprep.mubr.f32.mxu1 %v12129_v26  ;;  %v7850_v32 = vsel %vm260_vm0, %v10400_v51, 0 }
 0x15a   : > { %v2386_v57 = vadd.f32 %v11107_v53, %v2290_v50  ;;  %v2283_v58 = vadd.f32 %v2282_v27, %v2191_v46  ;;  %11511 = vmatprep.subr.mxu0 %v12580_v62  ;;  %11519 = vmatprep.subr.mxu1 %v7409_v47  ;;  %v12646_v41 = vand.u32 4294901760, %v7850_v32 }
 0x15b   : > { %v11102_v61 = vpop.f32.mrf.mxu0  ;;  %11485 = vmatmul.mubr.f32.gmra.mxu0 %v12126_v25  ;;  %v11110_v0 = vpop.f32.mrf.mxu1  ;;  %11493 = vmatmul.mubr.f32.gmra.mxu1 %v12136_v30 }
 0x15c   : > { %v2378_v63 = vadd.f32 %v2377_v59, %v2283_v58  ;;  %v2304_v3 = vadd.f32 %v11102_v61, %v2209_v54  ;;  %11497 = vmatprep.mubr.f32.mxu0 %v12097_v9  ;;  %11505 = vmatprep.mubr.f32.mxu1 %v12097_v9  ;;  %v12658_v31 = vsub.f32 %v7850_v32, %v12646_v41 }
 0x15d   : > { %v2296_v4 = vpop.f32.mrf.mxu0  ;;  %v2393_v8 = vpop.f32.mrf.mxu1 }
 0x15e   : > { %v2402_v5 = vadd.f32 %v11110_v0, %v2304_v3  ;;  %v2297_v7 = vadd.f32 %v2296_v4, %v2203_v40  ;;  %v12673_v6 = vand.u32 4294901760, %v12658_v31 }
 0x15f   : > { %v11115_v11 = vpop.f32.mrf.mxu0  ;;  %11498 = vmatmul.mubr.f32.vlgmr.msra.gmra.mxu0 %v12099_v10  ;;  %v11123_v48 = vpop.f32.mrf.mxu1  ;;  %11506 = vmatmul.mubr.f32.vlgmr.msra.gmra.mxu1 %v12099_v10 }
 0x160   : > { %v2394_v15 = vadd.f32 %v2393_v8, %v2297_v7  ;;  %v2482_v17 = vadd.f32 %v11115_v11, %v2386_v57  ;;  %11512 = vmatpush3.msra.mxu0 %v12580_v62  ;;  %11500 = vmatprep.mubr.f32.mxu0 %v12102_v13  ;;  %v10401_v11 = vld [vmem:[%s12077_s8 + $0x38] sm:$0xf] }
 0x161   : > { %v2475_v45 = vpop.f32.mrf.mxu0  ;;  %11520 = vmatpush3.msra.mxu1 %v7409_v47  ;;  %v2565_v34 = vpop.f32.mrf.mxu1  ;;  %11508 = vmatprep.mubr.f32.mxu1 %v12102_v13 }
 0x162   : > { %v12651_v23 = vadd.f32 %v11123_v48, %v2482_v17  ;;  %v2476_v28 = vadd.f32 %v2475_v45, %v2378_v63  ;;  %11527 = vmatprep.subr.mxu0 %v12590_v12  ;;  %11535 = vmatprep.subr.mxu1 %v12580_v62 }
 0x163   : > { %v11118_v44 = vpop.f32.mrf.mxu0  ;;  %11501 = vmatmul.mubr.f32.gmra.mxu0 %v12112_v19  ;;  %v11126_v49 = vpop.f32.mrf.mxu1  ;;  %11509 = vmatmul.mubr.f32.gmra.mxu1 %v12112_v19 }
 0x164   : > { %v2588_v36 = vmax.f32 %v12595_v14, %v12651_v23  ;;  %v12662_v42 = vadd.f32 %v2565_v34, %v2476_v28  ;;  %v2494_v56 = vadd.f32 %v11118_v44, %v2402_v5  ;;  %11513 = vmatprep.mubr.f32.mxu0 %v12141_v33  ;;  %11521 = vmatprep.mubr.f32.mxu1 %v12097_v9 }
 0x165   : > { %v2487_v46 = vpop.f32.mrf.mxu0  ;;  %v2577_v54 = vpop.f32.mrf.mxu1 }
 0x166   : > { %v2587_v1 = vmax.f32 %v12603_v21, %v12662_v42  ;;  %v12669_v52 = vadd.f32 %v11126_v49, %v2494_v56  ;;  %v2488_v39 = vadd.f32 %v2487_v46, %v2394_v15 }
 0x167   : > { %v11131_v2 = vpop.f32.mrf.mxu0  ;;  %11514 = vmatmul.mubr.f32.vlgmr.msra.gmra.mxu0 %v12143_v35  ;;  %v11139_v47 = vpop.f32.mrf.mxu1  ;;  %11522 = vmatmul.mubr.f32.vlgmr.msra.gmra.mxu1 %v12099_v10 }
 0x168   : > { %v2590_v40 = vmax.f32 %v12612_v29, %v12669_v52  ;;  %v12677_v43 = vadd.f32 %v2577_v54, %v2488_v39  ;;  %11528 = vmatpush3.msra.mxu0 %v12590_v12  ;;  %v2781_v50 = vadd.f32 %v11139_v47, %v11131_v2  ;;  %11516 = vmatprep.mubr.f32.mxu0 %v12147_v37 }
 0x169   : > { %v2668_v53 = vpop.f32.mrf.mxu0  ;;  %11536 = vmatpush3.msra.mxu1 %v12580_v62  ;;  %v2774_v51 = vpop.f32.mrf.mxu1  ;;  %11524 = vmatprep.mubr.f32.mxu1 %v12102_v13  ;;  %v7992_v12 = vsub.f32 %v12658_v31, %v12673_v6 }
 0x16a   : > { %v2589_v27 = vmax.f32 %v12621_v60, %v12677_v43  ;;  %11543 = vmatprep.subr.mxu0 %v12607_v55  ;;  %v2775_v57 = vadd.f32 %v2774_v51, %v2668_v53  ;;  %11551 = vmatprep.subr.mxu1 %v12580_v62 }
 0x16b   : > { %v11134_v58 = vpop.f32.mrf.mxu0  ;;  %11517 = vmatmul.mubr.f32.gmra.mxu0 %v12151_v38  ;;  %v11142_v59 = vpop.f32.mrf.mxu1  ;;  %11525 = vmatmul.mubr.f32.gmra.mxu1 %v12112_v19  ;;  %v7993_v4 = vand.u32 4294901760, %v7992_v12 }
 0x16c   : > { %11529 = vmatprep.mubr.f32.mxu0 %v12106_v16  ;;  %v2793_v61 = vadd.f32 %v11142_v59, %v11134_v58  ;;  %11537 = vmatprep.mubr.f32.mxu1 %v12120_v22 }
 0x16d   : > { %v2688_v63 = vpop.f32.mrf.mxu0  ;;  %v2786_v3 = vpop.f32.mrf.mxu1 }
 0x16e   : > { %v2787_v0 = vadd.f32 %v2786_v3, %v2688_v63 }
 0x16f   : > { %v11147_v32 = vpop.f32.mrf.mxu0  ;;  %11530 = vmatmul.mubr.f32.vlgmr.msra.gmra.mxu0 %v12109_v18  ;;  %v11155_v7 = vpop.f32.mrf.mxu1  ;;  %11538 = vmatmul.mubr.f32.vlgmr.msra.gmra.mxu1 %v12123_v24 }
 0x170   : > { %v2874_v5 = vadd.f32 %v11147_v32, %v2781_v50  ;;  %11544 = vmatpush3.msra.mxu0 %v12607_v55  ;;  %11532 = vmatprep.mubr.f32.mxu0 %v12115_v20 }
 0x171   : > { %v2866_v8 = vpop.f32.mrf.mxu0  ;;  %11552 = vmatpush3.msra.mxu1 %v12580_v62  ;;  %v2961_v48 = vpop.f32.mrf.mxu1  ;;  %11540 = vmatprep.mubr.f32.mxu1 %v12129_v26  ;;  %v8434_v62 = vsel %vm260_vm0, %v10401_v11, 0 }
 0x172   : > { %v2970_v15 = vadd.f32 %v11155_v7, %v2874_v5  ;;  %v2867_v17 = vadd.f32 %v2866_v8, %v2775_v57  ;;  %11559 = vmatprep.subr.mxu0 %v12646_v41  ;;  %11567 = vmatprep.subr.mxu1 %v7993_v4  ;;  %v12708_v54 = vand.u32 4294901760, %v8434_v62  ;;  %v11940_v8 = vmov 0  }
 0x173   : > { %v11150_v45 = vpop.f32.mrf.mxu0  ;;  %11533 = vmatmul.mubr.f32.gmra.mxu0 %v12126_v25  ;;  %v11158_v55 = vpop.f32.mrf.mxu1  ;;  %11541 = vmatmul.mubr.f32.gmra.mxu1 %v12136_v30 }
 0x174   : > { %v2962_v28 = vadd.f32 %v2961_v48, %v2867_v17  ;;  %v2888_v34 = vadd.f32 %v11150_v45, %v2793_v61  ;;  %11545 = vmatprep.mubr.f32.mxu0 %v12097_v9  ;;  %11553 = vmatprep.mubr.f32.mxu1 %v12097_v9  ;;  %v12718_v59 = vsub.f32 %v8434_v62, %v12708_v54 }
 0x175   : > { %v2880_v44 = vpop.f32.mrf.mxu0  ;;  %v2977_v46 = vpop.f32.mrf.mxu1  ;;  %11840 = vset.pattern.permute.xlu0 %v11940_v8  ;;  %11841 = vset.pattern.permute.xlu1 %v11940_v8 }
 0x176   : > { %v2986_v56 = vadd.f32 %v11158_v55, %v2888_v34  ;;  %v2881_v49 = vadd.f32 %v2880_v44, %v2787_v0 }
 0x177   : > { %v11163_v39 = vpop.f32.mrf.mxu0  ;;  %11546 = vmatmul.mubr.f32.vlgmr.msra.gmra.mxu0 %v12099_v10  ;;  %v11171_v50 = vpop.f32.mrf.mxu1  ;;  %11554 = vmatmul.mubr.f32.vlgmr.msra.gmra.mxu1 %v12099_v10 }
 0x178   : > { %v2978_v2 = vadd.f32 %v2977_v46, %v2881_v49  ;;  %v3066_v47 = vadd.f32 %v11163_v39, %v2970_v15  ;;  %11560 = vmatpush3.msra.mxu0 %v12646_v41  ;;  %11548 = vmatprep.mubr.f32.mxu0 %v12102_v13  ;;  %v10402_v46 = vld [vmem:[%s12077_s8 + $0x3c] sm:$0xf] }
 0x179   : > { %v3059_v53 = vpop.f32.mrf.mxu0  ;;  %11568 = vmatpush3.msra.mxu1 %v7993_v4  ;;  %v3149_v58 = vpop.f32.mrf.mxu1  ;;  %11556 = vmatprep.mubr.f32.mxu1 %v12102_v13 }
 0x17a   : > { %v3156_v51 = vadd.f32 %v11171_v50, %v3066_v47  ;;  %v3060_v57 = vadd.f32 %v3059_v53, %v2962_v28  ;;  %11575 = vmatprep.subr.mxu0 %v12658_v31  ;;  %11583 = vmatprep.subr.mxu1 %v12646_v41  ;;  %v9601_v50 = vld [vmem:[%s13155_s2 + $0x10] sm:$0xff] }
 0x17b   : > { %v11166_v12 = vpop.f32.mrf.mxu0  ;;  %11549 = vmatmul.mubr.f32.gmra.mxu0 %v12112_v19  ;;  %v11174_v0 = vpop.f32.mrf.mxu1  ;;  %11557 = vmatmul.mubr.f32.gmra.mxu1 %v12112_v19 }
 0x17c   : > { %v12723_v61 = vmax.f32 %v2588_v36, %v3156_v51  ;;  %v3150_v63 = vadd.f32 %v3149_v58, %v3060_v57  ;;  %v3078_v3 = vadd.f32 %v11166_v12, %v2986_v56  ;;  %11561 = vmatprep.mubr.f32.mxu0 %v12141_v33  ;;  %11569 = vmatprep.mubr.f32.mxu1 %v12097_v9  ;;  %v12735_v36 = vand.u32 4294901760, %v12718_v59 }
 0x17d   : > { %v3071_v32 = vpop.f32.mrf.mxu0  ;;  %v3161_v14 = vpop.f32.mrf.mxu1  ;;  %v9018_v58 = vsel %vm260_vm0, %v10402_v46, 0 }
 0x17e   : > { %v12731_v4 = vmax.f32 %v2587_v1, %v3150_v63  ;;  %v3168_v5 = vadd.f32 %v11174_v0, %v3078_v3  ;;  %v3072_v7 = vadd.f32 %v3071_v32, %v2978_v2  ;;  %v8576_v60 = vsub.f32 %v12718_v59, %v12735_v36 }
 0x17f   : > { %v11179_v23 = vpop.f32.mrf.mxu0  ;;  %11562 = vmatmul.mubr.f32.vlgmr.msra.gmra.mxu0 %v12143_v35  ;;  %v11187_v21 = vpop.f32.mrf.mxu1  ;;  %11570 = vmatmul.mubr.f32.vlgmr.msra.gmra.mxu1 %v12099_v10 }
 0x180   : > { %v12740_v11 = vmax.f32 %v2590_v40, %v3168_v5  ;;  %v3162_v15 = vadd.f32 %v3161_v14, %v3072_v7  ;;  %11576 = vmatpush3.msra.mxu0 %v12658_v31  ;;  %v3365_v42 = vadd.f32 %v11187_v21, %v11179_v23  ;;  %11564 = vmatprep.mubr.f32.mxu0 %v12147_v37  ;;  %v9602_v31 = vld [vmem:[%s13155_s2 + $0x18] sm:$0xff]  ;;  %v8577_v62 = vand.u32 4294901760, %v8576_v60 }
 0x181   : > { %v3252_v1 = vpop.f32.mrf.mxu0  ;;  %11584 = vmatpush3.msra.mxu1 %v12646_v41  ;;  %v3358_v29 = vpop.f32.mrf.mxu1  ;;  %11572 = vmatprep.mubr.f32.mxu1 %v12102_v13  ;;  %v12786_v5 = vand.u32 4294901760, %v9018_v58 }
 0x182   : > { %v12749_v17 = vmax.f32 %v2589_v27, %v3162_v15  ;;  %11591 = vmatprep.subr.mxu0 %v12673_v6  ;;  %v3359_v52 = vadd.f32 %v3358_v29, %v3252_v1  ;;  %11599 = vmatprep.subr.mxu1 %v12646_v41  ;;  %v9600_v27 = vld [vmem:[%s13155_s2 + $0x8] sm:$0xff]  ;;  %v9635_v1 = vld [vmem:[%s13157_s4] sm:$0xff] }
 0x183   : > { %v11182_v40 = vpop.f32.mrf.mxu0  ;;  %11565 = vmatmul.mubr.f32.gmra.mxu0 %v12151_v38  ;;  %v11190_v43 = vpop.f32.mrf.mxu1  ;;  %11573 = vmatmul.mubr.f32.gmra.mxu1 %v12112_v19 }
 0x184   : > { %11577 = vmatprep.mubr.f32.mxu0 %v12106_v16  ;;  %v3377_v48 = vadd.f32 %v11190_v43, %v11182_v40  ;;  %11585 = vmatprep.mubr.f32.mxu1 %v12120_v22 }
 0x185   : > { %v3272_v45 = vpop.f32.mrf.mxu0  ;;  %9620 = vperm.xlu0 %11840, %v9602_v31   ;;  %v3370_v28 = vpop.f32.mrf.mxu1  ;;  %9610 = vperm.xlu1 %11841, %v9600_v27   ;;  %v12801_v31 = vsub.f32 %v9018_v58, %v12786_v5 }
 0x186   : > { %v3371_v34 = vadd.f32 %v3370_v28, %v3272_v45 }
 0x187   : > { %v11195_v55 = vpop.f32.mrf.mxu0  ;;  %11578 = vmatmul.mubr.f32.vlgmr.msra.gmra.mxu0 %v12109_v18  ;;  %v11203_v56 = vpop.f32.mrf.mxu1  ;;  %11586 = vmatmul.mubr.f32.vlgmr.msra.gmra.mxu1 %v12123_v24 }
 0x188   : > { %v3458_v44 = vadd.f32 %v11195_v55, %v3365_v42  ;;  %11592 = vmatpush3.msra.mxu0 %v12673_v6  ;;  %11580 = vmatprep.mubr.f32.mxu0 %v12115_v20 }
 0x189   : > { %v3450_v49 = vpop.f32.mrf.mxu0  ;;  %11600 = vmatpush3.msra.mxu1 %v12646_v41  ;;  %v3545_v47 = vpop.f32.mrf.mxu1  ;;  %11588 = vmatprep.mubr.f32.mxu1 %v12129_v26  ;;  %v9599_v41 = vld [vmem:[%s13155_s2] sm:$0xff] }
 0x18a   : > { %v3554_v39 = vadd.f32 %v11203_v56, %v3458_v44  ;;  %v3451_v2 = vadd.f32 %v3450_v49, %v3359_v52  ;;  %11607 = vmatprep.subr.mxu0 %v12708_v54  ;;  %11615 = vmatprep.subr.mxu1 %v8577_v62  ;;  %v9636_v52 = vld [vmem:[%s13157_s4 + $0x8] sm:$0xff]  ;;  %v12819_v44 = vand.u32 4294901760, %v12801_v31 }
 0x18b   : > { %v11198_v53 = vpop.f32.mrf.mxu0  ;;  %11581 = vmatmul.mubr.f32.gmra.mxu0 %v12126_v25  ;;  %v11206_v57 = vpop.f32.mrf.mxu1  ;;  %11589 = vmatmul.mubr.f32.gmra.mxu1 %v12136_v30 }
 0x18c   : > { %v3546_v6 = vadd.f32 %v3545_v47, %v3451_v2  ;;  %v3472_v51 = vadd.f32 %v11198_v53, %v3377_v48  ;;  %11593 = vmatprep.mubr.f32.mxu0 %v12097_v9  ;;  %11601 = vmatprep.mubr.f32.mxu1 %v12097_v9  ;;  %v9637_v53 = vld [vmem:[%s13157_s4 + $0x10] sm:$0xff] }
 0x18d   : > { %v3464_v12 = vpop.f32.mrf.mxu0  ;;  %9615 = vperm.xlu0 %11840, %v9601_v50   ;;  %v3561_v0 = vpop.f32.mrf.mxu1  ;;  %9605 = vperm.xlu1 %11841, %v9599_v41  }
 0x18e   : > { %v3570_v63 = vadd.f32 %v11206_v57, %v3472_v51  ;;  %v3465_v3 = vadd.f32 %v3464_v12, %v3371_v34  ;;  %v9638_v51 = vld [vmem:[%s13157_s4 + $0x18] sm:$0xff] }
 0x18f   : > { %v11211_v32 = vpop.f32.mrf.mxu0  ;;  %11594 = vmatmul.mubr.f32.vlgmr.msra.gmra.mxu0 %v12099_v10  ;;  %v11219_v23 = vpop.f32.mrf.mxu1  ;;  %11602 = vmatmul.mubr.f32.vlgmr.msra.gmra.mxu1 %v12099_v10 }
 0x190   : > { %v3562_v7 = vadd.f32 %v3561_v0, %v3465_v3  ;;  %v3650_v14 = vadd.f32 %v11211_v32, %v3554_v39  ;;  %11608 = vmatpush3.msra.mxu0 %v12708_v54  ;;  %11596 = vmatprep.mubr.f32.mxu0 %v12102_v13 }
 0x191   : > { %v3643_v8 = vpop.f32.mrf.mxu0  ;;  %11616 = vmatpush3.msra.mxu1 %v8577_v62  ;;  %v3733_v42 = vpop.f32.mrf.mxu1  ;;  %11604 = vmatprep.mubr.f32.mxu1 %v12102_v13 }
 0x192   : > { %v12791_v15 = vadd.f32 %v11219_v23, %v3650_v14  ;;  %v3644_v21 = vadd.f32 %v3643_v8, %v3546_v6  ;;  %11623 = vmatprep.subr.mxu0 %v12718_v59  ;;  %11631 = vmatprep.subr.mxu1 %v12708_v54  ;;  %v9160_v6 = vsub.f32 %v12801_v31, %v12819_v44 }
 0x193   : > { %v11214_v29 = vpop.f32.mrf.mxu0  ;;  %11597 = vmatmul.mubr.f32.gmra.mxu0 %v12112_v19  ;;  %v11222_v27 = vpop.f32.mrf.mxu1  ;;  %11605 = vmatmul.mubr.f32.gmra.mxu1 %v12112_v19 }
 0x194   : > { %v3756_v40 = vmax.f32 %v12723_v61, %v12791_v15  ;;  %v12808_v60 = vadd.f32 %v3733_v42, %v3644_v21  ;;  %v3662_v43 = vadd.f32 %v11214_v29, %v3570_v63  ;;  %11609 = vmatprep.mubr.f32.mxu0 %v12141_v33  ;;  %11617 = vmatprep.mubr.f32.mxu1 %v12097_v9  ;;  %v9161_v32 = vand.u32 4294901760, %v9160_v6 }
 0x195   : > { %v3655_v48 = vpop.f32.mrf.mxu0  ;;  %9641 = vperm.xlu0 %11840, %v9635_v1   ;;  %v3745_v55 = vpop.f32.mrf.mxu1  ;;  %9646 = vperm.xlu1 %11841, %v9636_v52  }
 0x196   : > { %v3755_v45 = vmax.f32 %v12731_v4, %v12808_v60  ;;  %v12815_v28 = vadd.f32 %v11222_v27, %v3662_v43  ;;  %v3656_v34 = vadd.f32 %v3655_v48, %v3562_v7 }
 0x197   : > { %v11227_v62 = vpop.f32.mrf.mxu0  ;;  %11610 = vmatmul.mubr.f32.vlgmr.msra.gmra.mxu0 %v12143_v35  ;;  %v11235_v46 = vpop.f32.mrf.mxu1  ;;  %11618 = vmatmul.mubr.f32.vlgmr.msra.gmra.mxu1 %v12099_v10 }
 0x198   : > { %v3758_v56 = vmax.f32 %v12740_v11, %v12815_v28  ;;  %v12823_v49 = vadd.f32 %v3745_v55, %v3656_v34  ;;  %11624 = vmatpush3.msra.mxu0 %v12718_v59  ;;  %v3949_v39 = vadd.f32 %v11235_v46, %v11227_v62  ;;  %11612 = vmatprep.mubr.f32.mxu0 %v12147_v37 }
 0x199   : > { %v3836_v2 = vpop.f32.mrf.mxu0  ;;  %11632 = vmatpush3.msra.mxu1 %v12708_v54  ;;  %v3942_v50 = vpop.f32.mrf.mxu1  ;;  %11620 = vmatprep.mubr.f32.mxu1 %v12102_v13 }
 0x19a   : > { %v3757_v47 = vmax.f32 %v12749_v17, %v12823_v49  ;;  %11639 = vmatprep.subr.mxu0 %v12735_v36  ;;  %v3943_v41 = vadd.f32 %v3942_v50, %v3836_v2  ;;  %11647 = vmatprep.subr.mxu1 %v12708_v54 }
 0x19b   : > { %v11230_v59 = vpop.f32.mrf.mxu0  ;;  %11613 = vmatmul.mubr.f32.gmra.mxu0 %v12151_v38  ;;  %v11238_v57 = vpop.f32.mrf.mxu1  ;;  %11621 = vmatmul.mubr.f32.gmra.mxu1 %v12112_v19 }
 0x19c   : > { %11625 = vmatprep.mubr.f32.mxu0 %v12106_v16  ;;  %v3961_v58 = vadd.f32 %v11238_v57, %v11230_v59  ;;  %11633 = vmatprep.mubr.f32.mxu1 %v12120_v22 }
 0x19d   : > { %v3856_v12 = vpop.f32.mrf.mxu0  ;;  %9651 = vperm.xlu0 %11840, %v9637_v53   ;;  %v3954_v63 = vpop.f32.mrf.mxu1  ;;  %9656 = vperm.xlu1 %11841, %v9638_v51  }
 0x19e   : > { %v3955_v3 = vadd.f32 %v3954_v63, %v3856_v12 }
 0x19f   : > { %v11243_v0 = vpop.f32.mrf.mxu0  ;;  %11626 = vmatmul.mubr.f32.vlgmr.msra.gmra.mxu0 %v12109_v18  ;;  %v11251_v14 = vpop.f32.mrf.mxu1  ;;  %11634 = vmatmul.mubr.f32.vlgmr.msra.gmra.mxu1 %v12123_v24 }
 0x1a0   : > { %v4042_v7 = vadd.f32 %v11243_v0, %v3949_v39  ;;  %11640 = vmatpush3.msra.mxu0 %v12735_v36  ;;  %11628 = vmatprep.mubr.f32.mxu0 %v12115_v20 }
 0x1a1   : > { %v4034_v23 = vpop.f32.mrf.mxu0  ;;  %11648 = vmatpush3.msra.mxu1 %v12708_v54  ;;  %v4129_v42 = vpop.f32.mrf.mxu1  ;;  %11636 = vmatprep.mubr.f32.mxu1 %v12129_v26 }
 0x1a2   : > { %v4138_v8 = vadd.f32 %v11251_v14, %v4042_v7  ;;  %v4035_v21 = vadd.f32 %v4034_v23, %v3943_v41  ;;  %11655 = vmatprep.subr.mxu0 %v12786_v5  ;;  %11663 = vmatprep.subr.mxu1 %v9161_v32 }
 0x1a3   : > { %v11246_v1 = vpop.f32.mrf.mxu0  ;;  %11629 = vmatmul.mubr.f32.gmra.mxu0 %v12126_v25  ;;  %v11254_v43 = vpop.f32.mrf.mxu1  ;;  %11637 = vmatmul.mubr.f32.gmra.mxu1 %v12136_v30 }
 0x1a4   : > { %v4130_v29 = vadd.f32 %v4129_v42, %v4035_v21  ;;  %v4056_v52 = vadd.f32 %v11246_v1, %v3961_v58  ;;  %11641 = vmatprep.mubr.f32.mxu0 %v12097_v9  ;;  %11649 = vmatprep.mubr.f32.mxu1 %v12097_v9 }
 0x1a5   : > { %v4048_v36 = vpop.f32.mrf.mxu0  ;;  %v4145_v48 = vpop.f32.mrf.mxu1 }
 0x1a6   : > { %v4154_v54 = vadd.f32 %v11254_v43, %v4056_v52  ;;  %v4049_v27 = vadd.f32 %v4048_v36, %v3955_v3 }
 0x1a7   : > { %v11259_v34 = vpop.f32.mrf.mxu0  ;;  %11642 = vmatmul.mubr.f32.vlgmr.msra.gmra.mxu0 %v12099_v10  ;;  %v11267_v46 = vpop.f32.mrf.mxu1  ;;  %11650 = vmatmul.mubr.f32.vlgmr.msra.gmra.mxu1 %v12099_v10 }
 0x1a8   : > { %v4146_v55 = vadd.f32 %v4145_v48, %v4049_v27  ;;  %v4234_v62 = vadd.f32 %v11259_v34, %v4138_v8  ;;  %11656 = vmatpush3.msra.mxu0 %v12786_v5  ;;  %11644 = vmatprep.mubr.f32.mxu0 %v12102_v13 }
 0x1a9   : > { %v4227_v39 = vpop.f32.mrf.mxu0  ;;  %11664 = vmatpush3.msra.mxu1 %v9161_v32  ;;  %v4317_v53 = vpop.f32.mrf.mxu1  ;;  %11652 = vmatprep.mubr.f32.mxu1 %v12102_v13 }
 0x1aa   : > { %v4324_v2 = vadd.f32 %v11267_v46, %v4234_v62  ;;  %v4228_v50 = vadd.f32 %v4227_v39, %v4130_v29  ;;  %11671 = vmatprep.subr.mxu0 %v12801_v31  ;;  %11679 = vmatprep.subr.mxu1 %v12786_v5 }
 0x1ab   : > { %v11262_v41 = vpop.f32.mrf.mxu0  ;;  %11645 = vmatmul.mubr.f32.gmra.mxu0 %v12112_v19  ;;  %v11270_v57 = vpop.f32.mrf.mxu1  ;;  %11653 = vmatmul.mubr.f32.gmra.mxu1 %v12112_v19 }
 0x1ac   : > { %v12868_v59 = vmax.f32 %v3756_v40, %v4324_v2  ;;  %v4318_v6 = vadd.f32 %v4317_v53, %v4228_v50  ;;  %v4246_v51 = vadd.f32 %v11262_v41, %v4154_v54  ;;  %11657 = vmatprep.mubr.f32.mxu0 %v12141_v33  ;;  %11665 = vmatprep.mubr.f32.mxu1 %v12097_v9 }
 0x1ad   : > { %v4239_v58 = vpop.f32.mrf.mxu0  ;;  %v4329_v61 = vpop.f32.mrf.mxu1 }
 0x1ae   : > { %v12876_v12 = vmax.f32 %v3755_v45, %v4318_v6  ;;  %v4336_v63 = vadd.f32 %v11270_v57, %v4246_v51  ;;  %v4240_v3 = vadd.f32 %v4239_v58, %v4146_v55 }
 0x1af   : > { %v11275_v15 = vpop.f32.mrf.mxu0  ;;  %11658 = vmatmul.mubr.f32.vlgmr.msra.gmra.mxu0 %v12143_v35  ;;  %v11283_v0 = vpop.f32.mrf.mxu1  ;;  %11666 = vmatmul.mubr.f32.vlgmr.msra.gmra.mxu1 %v12099_v10 }
 0x1b0   : > { %v12882_v40 = vmax.f32 %v3758_v56, %v4336_v63  ;;  %v4330_v33 = vadd.f32 %v4329_v61, %v4240_v3  ;;  %11672 = vmatpush3.msra.mxu0 %v12801_v31  ;;  %v4533_v4 = vadd.f32 %v11283_v0, %v11275_v15  ;;  %11660 = vmatprep.mubr.f32.mxu0 %v12147_v37 }
 0x1b1   : > { %v4420_v60 = vpop.f32.mrf.mxu0  ;;  %11680 = vmatpush3.msra.mxu1 %v12786_v5  ;;  %v4526_v11 = vpop.f32.mrf.mxu1  ;;  %11668 = vmatprep.mubr.f32.mxu1 %v12102_v13 }
 0x1b2   : > { %v12891_v35 = vmax.f32 %v3757_v47, %v4330_v33  ;;  %11687 = vmatprep.subr.mxu0 %v12819_v44  ;;  %11695 = vmatprep.subr.mxu1 %v12786_v5 }
 0x1b3   : > { %v11278_v45 = vpop.f32.mrf.mxu0  ;;  %11661 = vmatmul.mubr.f32.gmra.mxu0 %v12151_v38  ;;  %v11286_v31 = vpop.f32.mrf.mxu1  ;;  %11669 = vmatmul.mubr.f32.gmra.mxu1 %v12112_v19 }
 0x1b4   : > { %11673 = vmatprep.mubr.f32.mxu0 %v12106_v16  ;;  %v4545_v37 = vadd.f32 %v11286_v31, %v11278_v45  ;;  %11681 = vmatprep.mubr.f32.mxu1 %v12120_v22  ;;  %v4527_v16 = vadd.f32 %v4526_v11, %v4420_v60 }
 0x1b5   : > { %v4440_v28 = vpop.f32.mrf.mxu0  ;;  %v4538_v17 = vpop.f32.mrf.mxu1 }
 0x1b7   : > { %v11291_v56 = vpop.f32.mrf.mxu0  ;;  %11674 = vmatmul.mubr.f32.vlgmr.msra.gmra.mxu0 %v12109_v18  ;;  %v11299_v47 = vpop.f32.mrf.mxu1  ;;  %11682 = vmatmul.mubr.f32.vlgmr.msra.gmra.mxu1 %v12123_v24 }
 0x1b8   : > { %v4626_v49 = vadd.f32 %v11291_v56, %v4533_v4  ;;  %11688 = vmatpush3.msra.mxu0 %v12819_v44  ;;  %11676 = vmatprep.mubr.f32.mxu0 %v12115_v20  ;;  %v4539_v20 = vadd.f32 %v4538_v17, %v4440_v28 }
 0x1b9   : > { %v4618_v38 = vpop.f32.mrf.mxu0  ;;  %11696 = vmatpush3.msra.mxu1 %v12786_v5  ;;  %v4713_v7 = vpop.f32.mrf.mxu1  ;;  %11684 = vmatprep.mubr.f32.mxu1 %v12129_v26 }
 0x1ba   : > { %v4722_v32 = vadd.f32 %v11299_v47, %v4626_v49  ;;  %v4619_v18 = vadd.f32 %v4618_v38, %v4527_v16 }
 0x1bb   : > { %v11294_v22 = vpop.f32.mrf.mxu0  ;;  %11677 = vmatmul.mubr.f32.gmra.mxu0 %v12126_v25  ;;  %v11302_v23 = vpop.f32.mrf.mxu1  ;;  %11685 = vmatmul.mubr.f32.gmra.mxu1 %v12136_v30 }
 0x1bc   : > { %v4640_v14 = vadd.f32 %v11294_v22, %v4545_v37  ;;  %11689 = vmatprep.mubr.f32.mxu0 %v12097_v9  ;;  %11697 = vmatprep.mubr.f32.mxu1 %v12097_v9  ;;  %v4714_v26 = vadd.f32 %v4713_v7, %v4619_v18 }
 0x1bd   : > { %v4632_v24 = vpop.f32.mrf.mxu0  ;;  %v4729_v44 = vpop.f32.mrf.mxu1 }
 0x1be   : > { %v4738_v5 = vadd.f32 %v11302_v23, %v4640_v14  ;;  %v4633_v21 = vadd.f32 %v4632_v24, %v4539_v20 }
 0x1bf   : > { %v11307_v8 = vpop.f32.mrf.mxu0  ;;  %11690 = vmatmul.mubr.f32.vlgmr.msra.gmra.mxu0 %v12099_v10  ;;  %v11315_v25 = vpop.f32.mrf.mxu1  ;;  %11698 = vmatmul.mubr.f32.vlgmr.msra.gmra.mxu1 %v12099_v10 }
 0x1c0   : > { %v4818_v42 = vadd.f32 %v11307_v8, %v4722_v32  ;;  %11692 = vmatprep.mubr.f32.mxu0 %v12102_v13  ;;  %11700 = vmatprep.mubr.f32.mxu1 %v12102_v13  ;;  %v4730_v43 = vadd.f32 %v4729_v44, %v4633_v21 }
 0x1c1   : > { %v4811_v30 = vpop.f32.mrf.mxu0  ;;  %v4901_v9 = vpop.f32.mrf.mxu1 }
 0x1c2   : > { %v4908_v1 = vadd.f32 %v11315_v25, %v4818_v42  ;;  %v4812_v29 = vadd.f32 %v4811_v30, %v4714_v26 }
 0x1c3   : > { %v11310_v52 = vpop.f32.mrf.mxu0  ;;  %11693 = vmatmul.mubr.f32.gmra.mxu0 %v12112_v19  ;;  %v11318_v48 = vpop.f32.mrf.mxu1  ;;  %11701 = vmatmul.mubr.f32.gmra.mxu1 %v12112_v19 }
 0x1c4   : > { %v4924_v36 = vmax.f32 %v12868_v59, %v4908_v1  ;;  %v4902_v54 = vadd.f32 %v4901_v9, %v4812_v29  ;;  %v4830_v27 = vadd.f32 %v11310_v52, %v4738_v5 }
 0x1c5   : > { %v4823_v10 = vpop.f32.mrf.mxu0  ;;  %v4913_v13 = vpop.f32.mrf.mxu1 }
 0x1c6   : > { %v4923_v34 = vmax.f32 %v12876_v12, %v4902_v54  ;;  %v4920_v55 = vadd.f32 %v11318_v48, %v4830_v27  ;;  %v4824_v62 = vadd.f32 %v4823_v10, %v4730_v43 }
 0x1c7   : > { %v11323_v46 = vpop.f32.mrf.mxu0  ;;  %v11331_v50 = vpop.f32.mrf.mxu1 }
 0x1c8   : > { %v4926_v39 = vmax.f32 %v12882_v40, %v4920_v55  ;;  %v4914_v2 = vadd.f32 %v4913_v13, %v4824_v62  ;;  %v5117_v53 = vadd.f32 %v11331_v50, %v11323_v46 }
 0x1c9   : > { %v5004_v41 = vpop.f32.mrf.mxu0  ;;  %v5110_v6 = vpop.f32.mrf.mxu1 }
 0x1ca   : > { %v4925_v59 = vmax.f32 %v12891_v35, %v4914_v2  ;;  %v5111_v51 = vadd.f32 %v5110_v6, %v5004_v41 }
 0x1cb   : > { %v11326_v57 = vpop.f32.mrf.mxu0  ;;  %v11334_v58 = vpop.f32.mrf.mxu1 }
 0x1cc   : > { %v5129_v19 = vadd.f32 %v11334_v58, %v11326_v57 }
 0x1cd   : > { %v5024_v63 = vpop.f32.mrf.mxu0  ;;  %v5122_v3 = vpop.f32.mrf.mxu1 }
 0x1ce   : > { %v5123_v12 = vadd.f32 %v5122_v3, %v5024_v63 }
 0x1cf   : > { %v11339_v61 = vpop.f32.mrf.mxu0  ;;  %v11347_v33 = vpop.f32.mrf.mxu1 }
 0x1d0   : > { %v5210_v15 = vadd.f32 %v11339_v61, %v5117_v53 }
 0x1d1   : > { %v5202_v0 = vpop.f32.mrf.mxu0  ;;  %v5297_v60 = vpop.f32.mrf.mxu1 }
 0x1d2   : > { %v5306_v4 = vadd.f32 %v11347_v33, %v5210_v15  ;;  %v5203_v40 = vadd.f32 %v5202_v0, %v5111_v51 }
 0x1d3   : > { %v11342_v11 = vpop.f32.mrf.mxu0  ;;  %v11350_v37 = vpop.f32.mrf.mxu1 }
 0x1d4   : > { %v5298_v45 = vadd.f32 %v5297_v60, %v5203_v40  ;;  %v5224_v31 = vadd.f32 %v11342_v11, %v5129_v19 }
 0x1d5   : > { %v5216_v35 = vpop.f32.mrf.mxu0  ;;  %v5313_v56 = vpop.f32.mrf.mxu1 }
 0x1d6   : > { %v5322_v28 = vadd.f32 %v11350_v37, %v5224_v31  ;;  %v5217_v17 = vadd.f32 %v5216_v35, %v5123_v12 }
 0x1d7   : > { %v11355_v49 = vpop.f32.mrf.mxu0  ;;  %v11363_v16 = vpop.f32.mrf.mxu1 }
 0x1d8   : > { %v5314_v47 = vadd.f32 %v5313_v56, %v5217_v17  ;;  %v5402_v38 = vadd.f32 %v11355_v49, %v5306_v4 }
 0x1d9   : > { %v5395_v32 = vpop.f32.mrf.mxu0  ;;  %v5485_v18 = vpop.f32.mrf.mxu1 }
 0x1da   : > { %v5492_v7 = vadd.f32 %v11363_v16, %v5402_v38  ;;  %v5396_v22 = vadd.f32 %v5395_v32, %v5298_v45 }
 0x1db   : > { %v11358_v14 = vpop.f32.mrf.mxu0  ;;  %v11366_v5 = vpop.f32.mrf.mxu1 }
 0x1dc   : > { %v12920_v23 = vmax.f32 %v4924_v36, %v5492_v7  ;;  %v5486_v24 = vadd.f32 %v5485_v18, %v5396_v22  ;;  %v5414_v20 = vadd.f32 %v11358_v14, %v5322_v28 }
 0x1dd   : > { %v5407_v44 = vpop.f32.mrf.mxu0  ;;  %v5497_v42 = vpop.f32.mrf.mxu1 }
 0x1de   : > { %v12922_v8 = vmax.f32 %v4923_v34, %v5486_v24  ;;  %v5504_v26 = vadd.f32 %v11366_v5, %v5414_v20  ;;  %v5408_v21 = vadd.f32 %v5407_v44, %v5314_v47 }
 0x1df   : > { %v11371_v25 = vpop.f32.mrf.mxu0  ;;  %v11379_v29 = vpop.f32.mrf.mxu1 }
 0x1e0   : > { %v12924_v30 = vmax.f32 %v4926_v39, %v5504_v26  ;;  %v5498_v1 = vadd.f32 %v5497_v42, %v5408_v21  ;;  %v5701_v9 = vadd.f32 %v11379_v29, %v11371_v25 }
 0x1e1   : > { %v5588_v52 = vpop.f32.mrf.mxu0  ;;  %v5694_v36 = vpop.f32.mrf.mxu1 }
 0x1e2   : > { %v12926_v43 = vmax.f32 %v4925_v59, %v5498_v1  ;;  %v5695_v54 = vadd.f32 %v5694_v36, %v5588_v52 }
 0x1e3   : > { %v11374_v27 = vpop.f32.mrf.mxu0  ;;  %v11382_v48 = vpop.f32.mrf.mxu1 }
 0x1e4   : > { %v5713_v10 = vadd.f32 %v11382_v48, %v11374_v27 }
 0x1e5   : > { %v5608_v55 = vpop.f32.mrf.mxu0  ;;  %v5706_v34 = vpop.f32.mrf.mxu1 }
 0x1e6   : > { %v5707_v62 = vadd.f32 %v5706_v34, %v5608_v55 }
 0x1e7   : > { %v11387_v13 = vpop.f32.mrf.mxu0  ;;  %v11395_v2 = vpop.f32.mrf.mxu1 }
 0x1e8   : > { %v5794_v46 = vadd.f32 %v11387_v13, %v5701_v9 }
 0x1e9   : > { %v5786_v50 = vpop.f32.mrf.mxu0  ;;  %v5881_v41 = vpop.f32.mrf.mxu1 }
 0x1ea   : > { %v5890_v39 = vadd.f32 %v11395_v2, %v5794_v46  ;;  %v5787_v53 = vadd.f32 %v5786_v50, %v5695_v54 }
 0x1eb   : > { %v11390_v6 = vpop.f32.mrf.mxu0  ;;  %v11398_v59 = vpop.f32.mrf.mxu1 }
 0x1ec   : > { %v5882_v51 = vadd.f32 %v5881_v41, %v5787_v53  ;;  %v5808_v57 = vadd.f32 %v11390_v6, %v5713_v10 }
 0x1ed   : > { %v5800_v58 = vpop.f32.mrf.mxu0  ;;  %v5897_v3 = vpop.f32.mrf.mxu1 }
 0x1ee   : > { %v5906_v19 = vadd.f32 %v11398_v59, %v5808_v57  ;;  %v5801_v63 = vadd.f32 %v5800_v58, %v5707_v62 }
 0x1ef   : > { %v11403_v12 = vpop.f32.mrf.mxu0  ;;  %v11411_v33 = vpop.f32.mrf.mxu1 }
 0x1f0   : > { %v5898_v61 = vadd.f32 %v5897_v3, %v5801_v63  ;;  %v5986_v15 = vadd.f32 %v11403_v12, %v5890_v39 }
 0x1f1   : > { %v5979_v0 = vpop.f32.mrf.mxu0  ;;  %v6069_v60 = vpop.f32.mrf.mxu1 }
 0x1f2   : > { %v6076_v4 = vadd.f32 %v11411_v33, %v5986_v15  ;;  %v5980_v40 = vadd.f32 %v5979_v0, %v5882_v51  ;;  %v9631_v51 = vld [vmem:[%s13156_s3] sm:$0xff] }
 0x1f3   : > { %v11406_v11 = vpop.f32.mrf.mxu0  ;;  %v11414_v35 = vpop.f32.mrf.mxu1  ;;  %v9661_v63 = vsel %vm9659_vm2, %v9631_v51, 0 }
 0x1f4   : > { %v6092_v45 = vmax.f32 %v12920_v23, %v6076_v4  ;;  %v6070_v31 = vadd.f32 %v6069_v60, %v5980_v40  ;;  %v5998_v37 = vadd.f32 %v11406_v11, %v5906_v19  ;;  %v12938_v12 = vand.u32 4294901760, %v9661_v63 }
 0x1f5   : > { %v5991_v28 = vpop.f32.mrf.mxu0  ;;  %v6081_v47 = vpop.f32.mrf.mxu1 }
 0x1f6   : > { %v6091_v17 = vmax.f32 %v12922_v8, %v6070_v31  ;;  %v6088_v56 = vadd.f32 %v11414_v35, %v5998_v37  ;;  %v5992_v49 = vadd.f32 %v5991_v28, %v5898_v61  ;;  %13173 = vst [vmem:[#allocation8_spill] sm:$0xff] %v12938_v12  ;;  %v12943_v40 = vsub.f32 %v9661_v63, %v12938_v12 }
 0x1f7   : > { %v11419_v38 = vpop.f32.mrf.mxu0  ;;  %v11427_v7 = vpop.f32.mrf.mxu1  ;;  %11725 = vmatprep.mubr.f32.mxu1 %v12938_v12 }
 0x1f8   : > { %v6094_v16 = vmax.f32 %v12924_v30, %v6088_v56  ;;  %v6082_v32 = vadd.f32 %v6081_v47, %v5992_v49  ;;  %v6285_v22 = vadd.f32 %v11427_v7, %v11419_v38  ;;  %13174 = vst [vmem:[#allocation9_spill] sm:$0xff] %v12943_v40  ;;  %v13161_v35 = vand.u32 4294901760, %v12943_v40 }
 0x1f9   : > { %v6172_v18 = vpop.f32.mrf.mxu0  ;;  %v6278_v24 = vpop.f32.mrf.mxu1 }
 0x1fa   : > { %v6093_v14 = vmax.f32 %v12926_v43, %v6082_v32  ;;  %v6279_v23 = vadd.f32 %v6278_v24, %v6172_v18  ;;  %v9744_v47 = vsub.f32 %v12943_v40, %v13161_v35 }
 0x1fb   : > { %v11422_v20 = vpop.f32.mrf.mxu0  ;;  %v11430_v5 = vpop.f32.mrf.mxu1 }
 0x1fc   : > { %v6297_v44 = vadd.f32 %v11430_v5, %v11422_v20 }
 0x1fd   : > { %v6192_v26 = vpop.f32.mrf.mxu0  ;;  %v6290_v21 = vpop.f32.mrf.mxu1 }
 0x1fe   : > { %v6291_v8 = vadd.f32 %v6290_v21, %v6192_v26 }
 0x1ff   : > { %v11435_v42 = vpop.f32.mrf.mxu0  ;;  %v11443_v1 = vpop.f32.mrf.mxu1 }
 0x200   : > { %v6378_v25 = vadd.f32 %v11435_v42, %v6285_v22 }
 0x201   : > { %v6370_v29 = vpop.f32.mrf.mxu0  ;;  %v6465_v52 = vpop.f32.mrf.mxu1 }
 0x202   : > { %v6474_v9 = vadd.f32 %v11443_v1, %v6378_v25  ;;  %v6371_v30 = vadd.f32 %v6370_v29, %v6279_v23 }
 0x203   : > { %v11438_v36 = vpop.f32.mrf.mxu0  ;;  %v11446_v48 = vpop.f32.mrf.mxu1 }
 0x204   : > { %v6466_v54 = vadd.f32 %v6465_v52, %v6371_v30  ;;  %v6392_v27 = vadd.f32 %v11438_v36, %v6297_v44 }
 0x205   : > { %v6384_v43 = vpop.f32.mrf.mxu0  ;;  %v6481_v34 = vpop.f32.mrf.mxu1 }
 0x206   : > { %v6490_v10 = vadd.f32 %v11446_v48, %v6392_v27  ;;  %v6385_v55 = vadd.f32 %v6384_v43, %v6291_v8 }
 0x207   : > { %v11451_v62 = vpop.f32.mrf.mxu0  ;;  %v11459_v2 = vpop.f32.mrf.mxu1 }
 0x208   : > { %v6482_v13 = vadd.f32 %v6481_v34, %v6385_v55  ;;  %v6570_v46 = vadd.f32 %v11451_v62, %v6474_v9 }
 0x209   : > { %v6563_v50 = vpop.f32.mrf.mxu0  ;;  %v6653_v41 = vpop.f32.mrf.mxu1 }
 0x20a   : > { %v6660_v39 = vadd.f32 %v11459_v2, %v6570_v46  ;;  %v6564_v53 = vadd.f32 %v6563_v50, %v6466_v54 }
 0x20b   : > { %v11454_v6 = vpop.f32.mrf.mxu0  ;;  %v11462_v19 = vpop.f32.mrf.mxu1 }
 0x20c   : > { %v12935_v57 = vmax.f32 %v6092_v45, %v6660_v39  ;;  %v6654_v59 = vadd.f32 %v6653_v41, %v6564_v53  ;;  %v6582_v58 = vadd.f32 %v11454_v6, %v6490_v10 }
 0x20d   : > { %v6575_v3 = vpop.f32.mrf.mxu0  ;;  %v6665_v0 = vpop.f32.mrf.mxu1 }
 0x20e   : > { %v12940_v61 = vmax.f32 %v6091_v17, %v6654_v59  ;;  %v6672_v15 = vadd.f32 %v11462_v19, %v6582_v58  ;;  %v6576_v33 = vadd.f32 %v6575_v3, %v6482_v13 }
 0x20f   : > { %v11467_v4 = vpop.f32.mrf.mxu0  ;;  %v11475_v45 = vpop.f32.mrf.mxu1 }
 0x210   : > { %v12946_v60 = vmax.f32 %v6094_v16, %v6672_v15  ;;  %v6666_v11 = vadd.f32 %v6665_v0, %v6576_v33  ;;  %v6869_v31 = vadd.f32 %v11475_v45, %v11467_v4  ;;  %v9745_v16 = vand.u32 4294901760, %v9744_v47 }
 0x211   : > { %v6756_v37 = vpop.f32.mrf.mxu0  ;;  %v6862_v17 = vpop.f32.mrf.mxu1 }
 0x212   : > { %v12949_v28 = vmax.f32 %v6093_v14, %v6666_v11  ;;  %v6863_v56 = vadd.f32 %v6862_v17, %v6756_v37  ;;  %11711 = vmatprep.mubr.f32.mxu0 %v9745_v16 }
 0x213   : > { %v11470_v49 = vpop.f32.mrf.mxu0  ;;  %v11478_v38 = vpop.f32.mrf.mxu1 }
 0x214   : > { %v6881_v32 = vadd.f32 %v11478_v38, %v11470_v49 }
 0x215   : > { %v6776_v7 = vpop.f32.mrf.mxu0  ;;  %v6874_v22 = vpop.f32.mrf.mxu1 }
 0x216   : > { %v6875_v18 = vadd.f32 %v6874_v22, %v6776_v7 }
 0x217   : > { %v11483_v24 = vpop.f32.mrf.mxu0  ;;  %v11491_v20 = vpop.f32.mrf.mxu1 }
 0x218   : > { %v6962_v23 = vadd.f32 %v11483_v24, %v6869_v31 }
 0x219   : > { %v6954_v5 = vpop.f32.mrf.mxu0  ;;  %v7049_v26 = vpop.f32.mrf.mxu1 }
 0x21a   : > { %v7058_v14 = vadd.f32 %v11491_v20, %v6962_v23  ;;  %v6955_v44 = vadd.f32 %v6954_v5, %v6863_v56 }
 0x21b   : > { %v11486_v21 = vpop.f32.mrf.mxu0  ;;  %v11494_v25 = vpop.f32.mrf.mxu1 }
 0x21c   : > { %v7050_v8 = vadd.f32 %v7049_v26, %v6955_v44  ;;  %v6976_v42 = vadd.f32 %v11486_v21, %v6881_v32 }
 0x21d   : > { %v6968_v1 = vpop.f32.mrf.mxu0  ;;  %v7065_v30 = vpop.f32.mrf.mxu1 }
 0x21e   : > { %v7074_v29 = vadd.f32 %v11494_v25, %v6976_v42  ;;  %v6969_v9 = vadd.f32 %v6968_v1, %v6875_v18 }
 0x21f   : > { %v11499_v52 = vpop.f32.mrf.mxu0  ;;  %v11507_v27 = vpop.f32.mrf.mxu1 }
 0x220   : > { %v7066_v36 = vadd.f32 %v7065_v30, %v6969_v9  ;;  %v7154_v54 = vadd.f32 %v11499_v52, %v7058_v14 }
 0x221   : > { %v7147_v48 = vpop.f32.mrf.mxu0  ;;  %v7237_v55 = vpop.f32.mrf.mxu1 }
 0x222   : > { %v7244_v43 = vadd.f32 %v11507_v27, %v7154_v54  ;;  %v7148_v10 = vadd.f32 %v7147_v48, %v7050_v8 }
 0x223   : > { %v11502_v34 = vpop.f32.mrf.mxu0  ;;  %v11510_v2 = vpop.f32.mrf.mxu1 }
 0x224   : > { %v7260_v62 = vmax.f32 %v12935_v57, %v7244_v43  ;;  %v7238_v13 = vadd.f32 %v7237_v55, %v7148_v10  ;;  %v7166_v46 = vadd.f32 %v11502_v34, %v7074_v29 }
 0x225   : > { %v7159_v50 = vpop.f32.mrf.mxu0  ;;  %v7249_v6 = vpop.f32.mrf.mxu1 }
 0x226   : > { %v7259_v39 = vmax.f32 %v12940_v61, %v7238_v13  ;;  %v7256_v53 = vadd.f32 %v11510_v2, %v7166_v46  ;;  %v7160_v41 = vadd.f32 %v7159_v50, %v7066_v36 }
 0x227   : > { %v11515_v51 = vpop.f32.mrf.mxu0  ;;  %v11523_v19 = vpop.f32.mrf.mxu1 }
 0x228   : > { %v7262_v59 = vmax.f32 %v12946_v60, %v7256_v53  ;;  %v7250_v58 = vadd.f32 %v7249_v6, %v7160_v41  ;;  %v7453_v63 = vadd.f32 %v11523_v19, %v11515_v51 }
 0x229   : > { %v7340_v3 = vpop.f32.mrf.mxu0  ;;  %v7446_v33 = vpop.f32.mrf.mxu1 }
 0x22a   : > { %v7261_v15 = vmax.f32 %v12949_v28, %v7250_v58  ;;  %v7447_v57 = vadd.f32 %v7446_v33, %v7340_v3 }
 0x22b   : > { %v11518_v0 = vpop.f32.mrf.mxu0  ;;  %v11526_v4 = vpop.f32.mrf.mxu1 }
 0x22c   : > { %v7465_v11 = vadd.f32 %v11526_v4, %v11518_v0 }
 0x22d   : > { %v7360_v45 = vpop.f32.mrf.mxu0  ;;  %v7458_v31 = vpop.f32.mrf.mxu1 }
 0x22e   : > { %v7459_v61 = vadd.f32 %v7458_v31, %v7360_v45 }
 0x22f   : > { %v11531_v37 = vpop.f32.mrf.mxu0  ;;  %v11539_v56 = vpop.f32.mrf.mxu1 }
 0x230   : > { %v7546_v17 = vadd.f32 %v11531_v37, %v7453_v63 }
 0x231   : > { %v7538_v49 = vpop.f32.mrf.mxu0  ;;  %v7633_v38 = vpop.f32.mrf.mxu1 }
 0x232   : > { %v7642_v47 = vadd.f32 %v11539_v56, %v7546_v17  ;;  %v7539_v60 = vadd.f32 %v7538_v49, %v7447_v57 }
 0x233   : > { %v11534_v32 = vpop.f32.mrf.mxu0  ;;  %v11542_v22 = vpop.f32.mrf.mxu1 }
 0x234   : > { %v7634_v7 = vadd.f32 %v7633_v38, %v7539_v60  ;;  %v7560_v16 = vadd.f32 %v11534_v32, %v7465_v11 }
 0x235   : > { %v7552_v28 = vpop.f32.mrf.mxu0  ;;  %v7649_v23 = vpop.f32.mrf.mxu1 }
 0x236   : > { %v7658_v18 = vadd.f32 %v11542_v22, %v7560_v16  ;;  %v7553_v24 = vadd.f32 %v7552_v28, %v7459_v61 }
 0x237   : > { %v11547_v20 = vpop.f32.mrf.mxu0  ;;  %v11555_v44 = vpop.f32.mrf.mxu1 }
 0x238   : > { %v7650_v5 = vadd.f32 %v7649_v23, %v7553_v24  ;;  %v7738_v14 = vadd.f32 %v11547_v20, %v7642_v47 }
 0x239   : > { %v7731_v26 = vpop.f32.mrf.mxu0  ;;  %v7821_v42 = vpop.f32.mrf.mxu1 }
 0x23a   : > { %v7828_v21 = vadd.f32 %v11555_v44, %v7738_v14  ;;  %v7732_v8 = vadd.f32 %v7731_v26, %v7634_v7 }
 0x23b   : > { %v11550_v25 = vpop.f32.mrf.mxu0  ;;  %v11558_v30 = vpop.f32.mrf.mxu1 }
 0x23c   : > { %v12958_v1 = vmax.f32 %v7260_v62, %v7828_v21  ;;  %v7822_v29 = vadd.f32 %v7821_v42, %v7732_v8  ;;  %v7750_v9 = vadd.f32 %v11550_v25, %v7658_v18 }
 0x23d   : > { %v7743_v52 = vpop.f32.mrf.mxu0  ;;  %v7833_v48 = vpop.f32.mrf.mxu1 }
 0x23e   : > { %13175 = vst [vmem:[#allocation10_spill] sm:$0xff] %v12958_v1  ;;  %v12960_v36 = vmax.f32 %v7259_v39, %v7822_v29  ;;  %v7840_v54 = vadd.f32 %v11558_v30, %v7750_v9  ;;  %v7744_v27 = vadd.f32 %v7743_v52, %v7650_v5 }
 0x23f   : > { %v11563_v43 = vpop.f32.mrf.mxu0  ;;  %v11571_v34 = vpop.f32.mrf.mxu1 }
 0x240   : > { %13176 = vst [vmem:[#allocation11_spill] sm:$0xff] %v12960_v36  ;;  %v12962_v10 = vmax.f32 %v7262_v59, %v7840_v54  ;;  %v7834_v55 = vadd.f32 %v7833_v48, %v7744_v27  ;;  %v8037_v29 = vadd.f32 %v11571_v34, %v11563_v43 }
 0x241   : > { %v7924_v13 = vpop.f32.mrf.mxu0  ;;  %v8030_v2 = vpop.f32.mrf.mxu1 }
 0x242   : > { %13177 = vst [vmem:[#allocation12_spill] sm:$0xff] %v12962_v10  ;;  %v12964_v46 = vmax.f32 %v7261_v15, %v7834_v55  ;;  %v8031_v30 = vadd.f32 %v8030_v2, %v7924_v13 }
 0x243   : > { %v11566_v62 = vpop.f32.mrf.mxu0  ;;  %v11574_v50 = vpop.f32.mrf.mxu1 }
 0x244   : > { %13178 = vst [vmem:[#allocation13_spill] sm:$0xff] %v12964_v46  ;;  %v8049_v55 = vadd.f32 %v11574_v50, %v11566_v62 }
 0x245   : > { %v7944_v53 = vpop.f32.mrf.mxu0  ;;  %v8042_v41 = vpop.f32.mrf.mxu1 }
 0x247   : > { %v11579_v6 = vpop.f32.mrf.mxu0  ;;  %v11587_v51 = vpop.f32.mrf.mxu1 }
 0x248   : > { %v8130_v54 = vadd.f32 %v11579_v6, %v8037_v29 }
 0x249   : > { %v8122_v39 = vpop.f32.mrf.mxu0  ;;  %v8217_v58 = vpop.f32.mrf.mxu1 }
 0x24a   : > { %v8123_v35 = vadd.f32 %v8122_v39, %v8031_v30  ;;  %v9611_v30 = vpop.permute.xlu1 %9610 }
 0x24b   : > { %v11582_v19 = vpop.f32.mrf.mxu0  ;;  %v12966_v63 = vpop.f32.mrf.mxu1 }
 0x24c   : > { %v8218_v43 = vadd.f32 %v8217_v58, %v8123_v35 }
 0x24d   : > { %v8136_v3 = vpop.f32.mrf.mxu0  ;;  %v12968_v59 = vpop.f32.mrf.mxu1 }
 0x24f   : > { %v11595_v33 = vpop.f32.mrf.mxu0  ;;  %v12970_v57 = vpop.f32.mrf.mxu1 }
 0x251   : > { %v8315_v15 = vpop.f32.mrf.mxu0  ;;  %v12972_v0 = vpop.f32.mrf.mxu1 }
 0x253   : > { %v12974_v4 = vpop.f32.mrf.mxu0  ;;  %v12976_v11 = vpop.f32.mrf.mxu1 }
 0x255   : > { %v12978_v45 = vpop.f32.mrf.mxu0  ;;  %v12980_v31 = vpop.f32.mrf.mxu1 }
 0x256   : > { %13179 = vst [vmem:[#allocation14_spill] sm:$0xff] %v12980_v31  ;;  %v8043_v31 = vadd.f32 %v8042_v41, %v7944_v53 }
 0x257   : > { %v11611_v61 = vpop.f32.mrf.mxu0  ;;  %v11619_v37 = vpop.f32.mrf.mxu1 }
 0x258   : > { %v8621_v27 = vadd.f32 %v11619_v37, %v11611_v61  ;;  %v8137_v34 = vadd.f32 %v8136_v3, %v8043_v31 }
 0x259   : > { %v8508_v17 = vpop.f32.mrf.mxu0  ;;  %v8614_v56 = vpop.f32.mrf.mxu1 }
 0x25a   : > { %v8615_v12 = vadd.f32 %v8614_v56, %v8508_v17  ;;  %v8316_v17 = vadd.f32 %v8315_v15, %v8218_v43 }
 0x25b   : > { %v11614_v49 = vpop.f32.mrf.mxu0  ;;  %v11622_v47 = vpop.f32.mrf.mxu1 }
 0x25c   : > { %v8633_v36 = vadd.f32 %v11622_v47, %v11614_v49 }
 0x25d   : > { %v8528_v60 = vpop.f32.mrf.mxu0  ;;  %v8626_v38 = vpop.f32.mrf.mxu1 }
 0x25e   : > { %v8627_v13 = vadd.f32 %v8626_v38, %v8528_v60  ;;  %v8406_v60 = vadd.f32 %v12972_v0, %v8316_v17 }
 0x25f   : > { %v11627_v32 = vpop.f32.mrf.mxu0  ;;  %v11635_v7 = vpop.f32.mrf.mxu1 }
 0x260   : > { %v8714_v46 = vadd.f32 %v11627_v32, %v8621_v27 }
 0x261   : > { %v8706_v16 = vpop.f32.mrf.mxu0  ;;  %v8801_v22 = vpop.f32.mrf.mxu1 }
 0x262   : > { %v8707_v1 = vadd.f32 %v8706_v16, %v8615_v12  ;;  %v8810_v37 = vadd.f32 %v11635_v7, %v8714_v46  ;;  %v9632_v12 = vld [vmem:[%s13156_s3 + $0x8] sm:$0xff] }
 0x263   : > { %v11630_v28 = vpop.f32.mrf.mxu0  ;;  %v11638_v18 = vpop.f32.mrf.mxu1  ;;  %v9664_v47 = vsel %vm9659_vm2, %v9632_v12, 0 }
 0x264   : > { %v8728_v2 = vadd.f32 %v11630_v28, %v8633_v36  ;;  %v8802_v56 = vadd.f32 %v8801_v22, %v8707_v1  ;;  %v8234_v36 = vadd.f32 %v12968_v59, %v8137_v34 }
 0x265   : > { %v8720_v24 = vpop.f32.mrf.mxu0  ;;  %v8817_v23 = vpop.f32.mrf.mxu1 }
 0x266   : > { %v8721_v53 = vadd.f32 %v8720_v24, %v8627_v13  ;;  %v8826_v3 = vadd.f32 %v11638_v18, %v8728_v2  ;;  %v8328_v38 = vadd.f32 %v12978_v45, %v8234_v36  ;;  %v9634_v13 = vld [vmem:[%s13156_s3 + $0x18] sm:$0xff]  ;;  %v13190_v2 = vld [vmem:[#allocation12_spill] sm:$0xff] }
 0x267   : > { %v11643_v20 = vpop.f32.mrf.mxu0  ;;  %v11651_v5 = vpop.f32.mrf.mxu1 }
 0x268   : > { %v8818_v32 = vadd.f32 %v8817_v23, %v8721_v53 }
 0x269   : > { %v8899_v14 = vpop.f32.mrf.mxu0  ;;  %v12982_v44 = vpop.f32.mrf.mxu1 }
 0x26a   : > { %13180 = vst [vmem:[#allocation15_spill] sm:$0xff] %v12982_v44 }
 0x26b   : > { %v11646_v26 = vpop.f32.mrf.mxu0  ;;  %v12984_v21 = vpop.f32.mrf.mxu1 }
 0x26c   : > { %13181 = vst [vmem:[#allocation16_spill] sm:$0xff] %v12984_v21  ;;  %v8144_v21 = vadd.f32 %v11582_v19, %v8049_v55  ;;  %v8918_v7 = vadd.f32 %v11646_v26, %v8826_v3 }
 0x26d   : > { %v12986_v8 = vpop.f32.mrf.mxu0  ;;  %v12988_v42 = vpop.f32.mrf.mxu1 }
 0x26e   : > { %13182 = vst [vmem:[#allocation17_spill] sm:$0xff] %v12986_v8  ;;  %13183 = vst [vmem:[#allocation18_spill] sm:$0xff] %v12988_v42  ;;  %v8226_v42 = vadd.f32 %v11587_v51, %v8130_v54  ;;  %v8242_v39 = vadd.f32 %v12966_v63, %v8144_v21  ;;  %v8906_v51 = vadd.f32 %v11643_v20, %v8810_v37  ;;  %v13186_v21 = vld [vmem:[#allocation10_spill] sm:$0xff]  ;;  %v13010_v54 = vand.u32 4294901760, %v9664_v47 }
 0x26f   : > { %v11659_v25 = vpop.f32.mrf.mxu0  ;;  %v11667_v9 = vpop.f32.mrf.mxu1 }
 0x270   : > { %v8322_v61 = vadd.f32 %v11595_v33, %v8226_v42  ;;  %v9205_v62 = vadd.f32 %v11667_v9, %v11659_v25  ;;  %v8334_v46 = vadd.f32 %v12974_v4, %v8242_v39  ;;  %v8900_v33 = vadd.f32 %v8899_v14, %v8802_v56 }
 0x271   : > { %v9092_v52 = vpop.f32.mrf.mxu0  ;;  %v9198_v48 = vpop.f32.mrf.mxu1  ;;  %v8996_v59 = vadd.f32 %v11651_v5, %v8906_v51  ;;  %v9633_v5 = vld [vmem:[%s13156_s3 + $0x10] sm:$0xff]  ;;  %v13192_v51 = vld [vmem:[#allocation13_spill] sm:$0xff] }
 0x272   : > { %v9199_v35 = vadd.f32 %v9198_v48, %v9092_v52  ;;  %v8412_v63 = vadd.f32 %v12970_v57, %v8322_v61  ;;  %v8424_v24 = vadd.f32 %v12976_v11, %v8334_v46  ;;  %v13184_v57 = vld [vmem:[#allocation15_spill] sm:$0xff]  ;;  %v9667_v39 = vsel %vm9659_vm2, %v9633_v5, 0 }
 0x273   : > { %v11662_v40 = vpop.f32.mrf.mxu0  ;;  %v11670_v10 = vpop.f32.mrf.mxu1  ;;  %v13189_v11 = vld [vmem:[#allocation16_spill] sm:$0xff]  ;;  %v9670_v46 = vsel %vm9659_vm2, %v9634_v13, 0 }
 0x274   : > { %v9217_v1 = vadd.f32 %v11670_v10, %v11662_v40  ;;  %v8990_v40 = vadd.f32 %v13184_v57, %v8900_v33  ;;  %v8428_v42 = vmax.f32 %v13186_v21, %v8412_v63  ;;  %v9008_v9 = vadd.f32 %v13189_v11, %v8918_v7 }
 0x275   : > { %v9112_v8 = vpop.f32.mrf.mxu0  ;;  %v9210_v44 = vpop.f32.mrf.mxu1  ;;  %v13185_v10 = vld [vmem:[#allocation17_spill] sm:$0xff]  ;;  %v13191_v37 = vld [vmem:[#allocation18_spill] sm:$0xff] }
 0x276   : > { %v9211_v22 = vadd.f32 %v9210_v44, %v9112_v8  ;;  %v8912_v20 = vadd.f32 %v13185_v10, %v8818_v32  ;;  %v13187_v44 = vld [vmem:[#allocation11_spill] sm:$0xff]  ;;  %v13188_v8 = vld [vmem:[#allocation14_spill] sm:$0xff]  ;;  %v9012_v27 = vmax.f32 %v8428_v42, %v8996_v59 }
 0x277   : > { %v11675_v6 = vpop.f32.mrf.mxu0  ;;  %v11683_v50 = vpop.f32.mrf.mxu1  ;;  %v8427_v26 = vmax.f32 %v13187_v44, %v8406_v60  ;;  %v8418_v29 = vadd.f32 %v13188_v8, %v8328_v38  ;;  %v13021_v60 = vsub.f32 %v9664_v47, %v13010_v54  ;;  %v13023_v38 = vand.u32 4294901760, %v9667_v39 }
 0x278   : > { %v9298_v58 = vadd.f32 %v11675_v6, %v9205_v62  ;;  %v8430_v6 = vmax.f32 %v13190_v2, %v8424_v24  ;;  %v9002_v62 = vadd.f32 %v13191_v37, %v8912_v20 }
 0x279   : > { %v9290_v41 = vpop.f32.mrf.mxu0  ;;  %v9385_v19 = vpop.f32.mrf.mxu1  ;;  %v9011_v61 = vmax.f32 %v8427_v26, %v8990_v40  ;;  %v13030_v40 = vsub.f32 %v9667_v39, %v13023_v38  ;;  %v9753_v20 = vand.u32 4294901760, %v13021_v60 }
 0x27a   : > { %v9291_v15 = vadd.f32 %v9290_v41, %v9199_v35  ;;  %v9394_v4 = vadd.f32 %v11683_v50, %v9298_v58  ;;  %v8429_v35 = vmax.f32 %v13192_v51, %v8418_v29  ;;  %v9014_v58 = vmax.f32 %v8430_v6, %v9008_v9 }
 0x27b   : > { %v11678_v31 = vpop.f32.mrf.mxu0  ;;  %v11686_v49 = vpop.f32.mrf.mxu1  ;;  %v9754_v44 = vsub.f32 %v13021_v60, %v9753_v20 }
 0x27c   : > { %v9312_v28 = vadd.f32 %v11678_v31, %v9217_v1  ;;  %v9386_v0 = vadd.f32 %v9385_v19, %v9291_v15  ;;  %v9621_v19 = vpop.permute.xlu0 %9620  ;;  %v9013_v15 = vmax.f32 %v8429_v35, %v9002_v62 }
 0x27d   : > { %v9304_v16 = vpop.f32.mrf.mxu0  ;;  %v9401_v18 = vpop.f32.mrf.mxu1 }
 0x27e   : > { %v9305_v25 = vadd.f32 %v9304_v16, %v9211_v22  ;;  %v9410_v48 = vadd.f32 %v11686_v49, %v9312_v28  ;;  %v9606_v49 = vpop.permute.xlu1 %9605  ;;  %v13025_v22 = vand.u32 4294901760, %v9670_v46 }
 0x27f   : > { %v11691_v14 = vpop.f32.mrf.mxu0  ;;  %v11699_v23 = vpop.f32.mrf.mxu1 }
 0x280   : > { %v9490_v45 = vadd.f32 %v11691_v14, %v9394_v4  ;;  %v9402_v17 = vadd.f32 %v9401_v18, %v9305_v25  ;;  %v9616_v24 = vpop.permute.xlu0 %9615  ;;  %v13036_v21 = vsub.f32 %v9670_v46, %v13025_v22 }
 0x281   : > { %v9483_v52 = vpop.f32.mrf.mxu0  ;;  %v9573_v34 = vpop.f32.mrf.mxu1 }
 0x282   : > { %v9580_v55 = vadd.f32 %v11699_v23, %v9490_v45  ;;  %v9484_v43 = vadd.f32 %v9483_v52, %v9386_v0  ;;  %v9763_v45 = vand.u32 4294901760, %v13030_v40  ;;  %v9773_v8 = vand.u32 4294901760, %v13036_v21  ;;  %v9647_v46 = vpop.permute.xlu1 %9646 }
 0x283   : > { %v11694_v50 = vpop.f32.mrf.mxu0  ;;  %v11702_v12 = vpop.f32.mrf.mxu1  ;;  %v9755_v52 = vand.u32 4294901760, %v9754_v44 }
 0x284   : > { %v9596_v56 = vmax.f32 %v9012_v27, %v9580_v55  ;;  %v9574_v53 = vadd.f32 %v9573_v34, %v9484_v43  ;;  %v9502_v41 = vadd.f32 %v11694_v50, %v9410_v48  ;;  %v9764_v9 = vsub.f32 %v13030_v40, %v9763_v45 }
 0x285   : > { %v9495_v36 = vpop.f32.mrf.mxu0  ;;  %v9585_v1 = vpop.f32.mrf.mxu1  ;;  %v9774_v55 = vsub.f32 %v13036_v21, %v9773_v8 }
 0x286   : > { %v9624_v3 = vadd.f32 %v9611_v30, %v9596_v56  ;;  %v9595_v33 = vmax.f32 %v9011_v61, %v9574_v53  ;;  %v9592_v31 = vadd.f32 %v11702_v12, %v9502_v41  ;;  %v9496_v63 = vadd.f32 %v9495_v36, %v9402_v17  ;;  %v13193_v17 = vld [vmem:[#allocation9_spill] sm:$0xff]  ;;  %v13195_v53 = vld [vmem:[#allocation8_spill] sm:$0xff] }
 0x287   : > { %v9765_v2 = vand.u32 4294901760, %v9764_v9  ;;  %v9775_v37 = vand.u32 4294901760, %v9774_v55  ;;  %v13194_v56 = vand.u32 4294901760, %v13193_v17 }
 0x288   : > { %v9628_v32 = vmax.f32 %v9624_v3, 0.0  ;;  %v9623_v7 = vadd.f32 %v9606_v49, %v9595_v33  ;;  %v9598_v16 = vmax.f32 %v9014_v58, %v9592_v31  ;;  %v9586_v59 = vadd.f32 %v9585_v1, %v9496_v63  ;;  %v9642_v31 = vpop.permute.xlu0 %9641 }
 0x28a   : > { %v9627_v4 = vmax.f32 %v9623_v7, 0.0  ;;  %v9626_v28 = vadd.f32 %v9621_v19, %v9598_v16  ;;  %v9597_v18 = vmax.f32 %v9013_v15, %v9586_v59  ;;  %v13027_v57 = vand.u32 4294901760, %v9628_v32 }
 0x28c   : > { %v9630_v10 = vmax.f32 %v9626_v28, 0.0  ;;  %v9625_v47 = vadd.f32 %v9616_v24, %v9597_v18  ;;  %v13033_v14 = vand.u32 4294901760, %v9627_v4  ;;  %v9821_v25 = vsub.f32 %v9628_v32, %v13027_v57  ;;  %v9652_v59 = vpop.permute.xlu0 %9651 }
 0x28e   : > { %v13038_v42 = vand.u32 4294901760, %v9630_v10  ;;  %v9629_v0 = vmax.f32 %v9625_v47, 0.0  ;;  %v9828_v26 = vsub.f32 %v9627_v4, %v13033_v14  ;;  %v9822_v30 = vand.u32 4294901760, %v9821_v25 }
 0x290   : > { %v9807_v23 = vsub.f32 %v9630_v10, %v13038_v42  ;;  %v13043_v5 = vand.u32 4294901760, %v9629_v0  ;;  %11703 = vmatprep.subr.mxu0 %v13038_v42  ;;  %v9829_v43 = vand.u32 4294901760, %v9828_v26  ;;  %v9823_v6 = vsub.f32 %v9821_v25, %v9822_v30 }
 0x291   : > { %11704 = vmatpush3.msra.mxu0 %v13038_v42 }
 0x292   : > { %v9814_v29 = vsub.f32 %v9629_v0, %v13043_v5  ;;  %11705 = vmatprep.subr.mxu0 %v13043_v5  ;;  %v9808_v11 = vand.u32 4294901760, %v9807_v23  ;;  %v9830_v62 = vsub.f32 %v9828_v26, %v9829_v43  ;;  %v9824_v50 = vand.u32 4294901760, %v9823_v6 }
 0x293   : > { %11706 = vmatpush3.msra.mxu0 %v13043_v5 }
 0x294   : > { %11707 = vmatprep.subr.mxu0 %v13027_v57  ;;  %v9809_v27 = vsub.f32 %v9807_v23, %v9808_v11  ;;  %v9815_v48 = vand.u32 4294901760, %v9814_v29  ;;  %v9831_v39 = vand.u32 4294901760, %v9830_v62 }
 0x295   : > { %11708 = vmatpush3.msra.mxu0 %v13027_v57 }
 0x296   : > { %11709 = vmatprep.subr.mxu0 %v13033_v14  ;;  %v9810_v34 = vand.u32 4294901760, %v9809_v27  ;;  %v9816_v13 = vsub.f32 %v9814_v29, %v9815_v48 }
 0x297   : > { %11710 = vmatpush3.msra.mxu0 %v13033_v14 }
 0x298   : > { %11712 = vmatmul.mubr.f32.vlgmr.msra.gmra.mxu0 %v9755_v52  ;;  %11717 = vmatprep.subr.mxu1 %v9810_v34  ;;  %v9817_v61 = vand.u32 4294901760, %v9816_v13 }
 0x299   : > { %11731 = vmatprep.subr.mxu0 %v9807_v23  ;;  %11718 = vmatpush3.msra.mxu1 %v9810_v34 }
 0x29a   : > { %11732 = vmatpush3.msra.mxu0 %v9807_v23  ;;  %11719 = vmatprep.subr.mxu1 %v9817_v61 }
 0x29b   : > { %11733 = vmatprep.subr.mxu0 %v9814_v29  ;;  %11714 = vmatprep.mubr.f32.mxu0 %v9765_v2 }
 0x29c   : > { %11720 = vmatpush3.msra.mxu1 %v9817_v61  ;;  %11734 = vmatpush3.msra.mxu0 %v9814_v29 }
 0x29d   : > { %11715 = vmatmul.mubr.f32.gmra.mxu0 %v9775_v37  ;;  %11721 = vmatprep.subr.mxu1 %v9824_v50 }
 0x29e   : > { %11735 = vmatprep.subr.mxu0 %v9821_v25  ;;  %11722 = vmatpush3.msra.mxu1 %v9824_v50 }
 0x29f   : > { %11736 = vmatpush3.msra.mxu0 %v9821_v25  ;;  %11723 = vmatprep.subr.mxu1 %v9831_v39 }
 0x2a0   : > { %11737 = vmatprep.subr.mxu0 %v9828_v26  ;;  %11724 = vmatpush3.msra.mxu1 %v9831_v39 }
 0x2a1   : > { %11738 = vmatpush3.msra.mxu0 %v9828_v26  ;;  %11726 = vmatmul.mubr.f32.vlgmr.msra.gmra.mxu1 %v13010_v54 }
 0x2a2   : > { %11739 = vmatprep.mubr.f32.mxu0 %v13193_v17  ;;  %11745 = vmatprep.subr.mxu1 %v13038_v42 }
 0x2a3   : > { %11759 = vmatprep.subr.mxu0 %v9808_v11  ;;  %11740 = vmatmul.mubr.f32.vlgmr.msra.gmra.mxu0 %v13021_v60  ;;  %v9657_v60 = vpop.permute.xlu1 %9656 }
 0x2a4   : > { %11746 = vmatpush3.msra.mxu1 %v13038_v42  ;;  %11760 = vmatpush3.msra.mxu0 %v9808_v11 }
 0x2a5   : > { %11747 = vmatprep.subr.mxu1 %v13043_v5  ;;  %11761 = vmatprep.subr.mxu0 %v9815_v48 }
 0x2a6   : > { %11728 = vmatprep.mubr.f32.mxu1 %v13023_v38  ;;  %11748 = vmatpush3.msra.mxu1 %v13043_v5 }
 0x2a7   : > { %11762 = vmatpush3.msra.mxu0 %v9815_v48  ;;  %11729 = vmatmul.mubr.f32.gmra.mxu1 %v13025_v22 }
 0x2a8   : > { %11749 = vmatprep.subr.mxu1 %v13027_v57  ;;  %11763 = vmatprep.subr.mxu0 %v9822_v30 }
 0x2a9   : > { %11742 = vmatprep.mubr.f32.mxu0 %v13030_v40  ;;  %11750 = vmatpush3.msra.mxu1 %v13027_v57 }
 0x2aa   : > { %11764 = vmatpush3.msra.mxu0 %v9822_v30  ;;  %11751 = vmatprep.subr.mxu1 %v13033_v14 }
 0x2ab   : > { %11743 = vmatmul.mubr.f32.gmra.mxu0 %v13036_v21  ;;  %11765 = vmatprep.subr.mxu0 %v9829_v43 }
 0x2ac   : > { %11752 = vmatpush3.msra.mxu1 %v13033_v14  ;;  %11753 = vmatprep.mubr.f32.mxu1 %v13194_v56 }
 0x2ad   : > { %11766 = vmatpush3.msra.mxu0 %v9829_v43  ;;  %11754 = vmatmul.mubr.f32.vlgmr.msra.gmra.mxu1 %v9753_v20 }
 0x2ae   : > { %11773 = vmatprep.subr.mxu1 %v13038_v42  ;;  %11767 = vmatprep.mubr.f32.mxu0 %v13195_v53 }
 0x2af   : > { %11774 = vmatpush3.msra.mxu1 %v13038_v42  ;;  %11768 = vmatmul.mubr.f32.vlgmr.msra.gmra.mxu0 %v13010_v54 }
 0x2b0   : > { %11775 = vmatprep.subr.mxu1 %v13043_v5  ;;  %11756 = vmatprep.mubr.f32.mxu1 %v9763_v45 }
 0x2b1   : > { %11776 = vmatpush3.msra.mxu1 %v13043_v5  ;;  %11770 = vmatprep.mubr.f32.mxu0 %v13023_v38 }
 0x2b2   : > { %11757 = vmatmul.mubr.f32.gmra.mxu1 %v9773_v8  ;;  %11777 = vmatprep.subr.mxu1 %v13027_v57 }
 0x2b3   : > { %11778 = vmatpush3.msra.mxu1 %v13027_v57  ;;  %11771 = vmatmul.mubr.f32.gmra.mxu0 %v13025_v22 }
 0x2b4   : > { %11779 = vmatprep.subr.mxu1 %v13033_v14  ;;  %11781 = vmatprep.mubr.f32.mxu1 %v13195_v53 }
 0x2b5   : > { %11780 = vmatpush3.msra.mxu1 %v13033_v14 }
 0x2b6   : > { %11782 = vmatmul.mubr.f32.vlgmr.msra.gmra.mxu1 %v13010_v54 }
 0x2b7   : > { %11784 = vmatprep.mubr.f32.mxu1 %v13023_v38 }
 0x2ba   : > { %11785 = vmatmul.mubr.f32.gmra.mxu1 %v13025_v22 }
 0x358   : > { %v11713_v41 = vpop.f32.mrf.mxu0 }
 0x359   : > { %v9758_v63 = vadd.f32 %v11713_v41, %v9647_v46 }
 0x35a   : > { %v9747_v12 = vpop.f32.mrf.mxu0 }
 0x35b   : > { %v9748_v15 = vadd.f32 %v9747_v12, %v9642_v31 }
 0x35d   : > { %v11716_v51 = vpop.f32.mrf.mxu0 }
 0x35e   : > { %v9778_v38 = vadd.f32 %v11716_v51, %v9657_v60 }
 0x35f   : > { %v9767_v35 = vpop.f32.mrf.mxu0 }
 0x360   : > { %v9768_v22 = vadd.f32 %v9767_v35, %v9652_v59 }
 0x361   : > { %v11727_v58 = vpop.f32.mrf.mxu1 }
 0x362   : > { %v9875_v49 = vadd.f32 %v11727_v58, %v9758_v63 }
 0x363   : > { %v9868_v19 = vpop.f32.mrf.mxu1  ;;  %v11741_v36 = vpop.f32.mrf.mxu0 }
 0x364   : > { %v9869_v32 = vadd.f32 %v9868_v19, %v9748_v15  ;;  %v9974_v4 = vadd.f32 %v11741_v36, %v9875_v49 }
 0x365   : > { %v9966_v33 = vpop.f32.mrf.mxu0 }
 0x366   : > { %v9967_v57 = vadd.f32 %v9966_v33, %v9869_v32 }
 0x367   : > { %v11730_v3 = vpop.f32.mrf.mxu1 }
 0x368   : > { %v9887_v28 = vadd.f32 %v11730_v3, %v9778_v38 }
 0x369   : > { %v9880_v1 = vpop.f32.mrf.mxu1 }
 0x36a   : > { %v9881_v40 = vadd.f32 %v9880_v1, %v9768_v22 }
 0x36b   : > { %v11744_v54 = vpop.f32.mrf.mxu0 }
 0x36c   : > { %v9988_v14 = vadd.f32 %v11744_v54, %v9887_v28 }
 0x36d   : > { %v9980_v7 = vpop.f32.mrf.mxu0  ;;  %v11755_v16 = vpop.f32.mrf.mxu1 }
 0x36e   : > { %v10073_v10 = vadd.f32 %v11755_v16, %v9974_v4  ;;  %v9981_v25 = vadd.f32 %v9980_v7, %v9881_v40 }
 0x36f   : > { %v10064_v18 = vpop.f32.mrf.mxu1  ;;  %v11769_v24 = vpop.f32.mrf.mxu0 }
 0x370   : > { %v10065_v21 = vadd.f32 %v10064_v18, %v9967_v57  ;;  %v10178_v45 = vadd.f32 %v11769_v24, %v10073_v10 }
 0x371   : > { %v10171_v47 = vpop.f32.mrf.mxu0 }
 0x372   : > { %v11758_v20 = vpop.f32.mrf.mxu1  ;;  %v10172_v44 = vadd.f32 %v10171_v47, %v10065_v21 }
 0x373   : > { %v11772_v0 = vpop.f32.mrf.mxu0  ;;  %v10089_v23 = vadd.f32 %v11758_v20, %v9988_v14 }
 0x374   : > { %v10080_v42 = vpop.f32.mrf.mxu1 }
 0x375   : > { %v10081_v26 = vadd.f32 %v10080_v42, %v9981_v25  ;;  %v10183_v29 = vpop.f32.mrf.mxu0  ;;  %v10190_v9 = vadd.f32 %v11772_v0, %v10089_v23 }
 0x376   : > { %v11783_v5 = vpop.f32.mrf.mxu1 }
 0x377   : > { %v10271_v8 = vadd.f32 %v11783_v5, %v10178_v45  ;;  %v10184_v48 = vadd.f32 %v10183_v29, %v10081_v26 }
 0x378   : > { %v10264_v11 = vpop.f32.mrf.mxu1 }
 0x379   : > { %v10287_v30 = vmax.f32 %v10271_v8, 0.0  ;;  %v10265_v52 = vadd.f32 %v10264_v11, %v10172_v44 }
 0x37a   : > { %v11786_v27 = vpop.f32.mrf.mxu1 }
 0x37b   : > { %10291 = vst [vmem:[%s241_s16 + $0x8] sm:$0xff] %v10287_v30  ;;  %v10286_v55 = vmax.f32 %v10265_v52, 0.0  ;;  %v10283_v43 = vadd.f32 %v11786_v27, %v10190_v9 }
 0x37c   : > { %v10276_v34 = vpop.f32.mrf.mxu1 }
 0x37d   : > { %10290 = vst [vmem:[%s241_s16] sm:$0xff] %v10286_v55  ;;  %v10289_v13 = vmax.f32 %v10283_v43, 0.0  ;;  %v10277_v2 = vadd.f32 %v10276_v34, %v10184_v48 }
 0x37f   : > { %10293 = vst [vmem:[%s241_s16 + $0x18] sm:$0xff] %v10289_v13  ;;  %v10288_v6 = vmax.f32 %v10277_v2, 0.0 }
 0x381   : > { %10292 = vst [vmem:[%s241_s16 + $0x10] sm:$0xff] %v10288_v6 }
 0x382   : > { %11883 = shalt.err (!%p11880_p9)
}
 0x383   : > { %s11884_s28 = scalar_lea.hbm %s13111_s11, 512  ;;  %s11888_s8 = scalar_lea.hbm %s13158_s5, 1536 }
 0x384   : > { %p11885_p0 = scmp.ne.s32.totalorder %s13111_s11, %s11884_s28  ;;  %p11889_p1 = scmp.lt.s32.totalorder %s13111_s11, %s13158_s5 }
 0x385   : > { %p11890_p3 = scmp.lt.s32.totalorder %s11888_s8, %s11884_s28 }
 0x386   : > { %p11886_p2 = pnand %p11885_p0, %p13196_p11 }
 0x387   : > { %p11891_p6 = por %p11890_p3, %p11889_p1 }
 0x388   : > { %p11887_p13 = pneg %p11886_p2 }
 0x38a   : > { %p11892_p10 = pnand %p11891_p6, %p11887_p13 }
 0x38c   : > { %11895 = shalt.err (!%p11892_p10)
}
 0x38d   : > { %s11942_s29 = smov 128   ;;  %s11943_s9 = smov 384  }
 0x38e   : > { %s11944_s10 = smov 8  }
 0x38f   : > { %11789 = dma.vmem_to_hbm [thread:$0]  (%p13196_p11), %s13106_s7, 512, %s13111_s11, %s10295_s13, %s11942_s29, %s11943_s9, %s11944_s10  }
 0x390 PF: > { %p11800_p12 = scmp.ge.s32.totalorder %s11934_s21, 2  ;;  %s10322_s17 = sand.u32 1, %s11922_s18  }
 0x391   : > { %p13197_p4 = scmp.ne.s32.totalorder %s13169_s6, 0  ;;  %s10323_s22 = scalar_lea.sflag [#allocation4], %s10322_s17 }
 0x393   : > { %p11796_p5 = pnand %p11800_p12, %p13197_p4 }
 0x395   : > { %p11797_p7 = pneg %p11796_p5 }
 0x397   : > { %11917 = dma.done.wait (%p11797_p7), %s10323_s22, 512  }
 0x398   : > { %11919 = vsyncadd (%p11797_p7), %s10323_s22, 4294966784  ;;  %p18_p8 = scmp.ge.s32.totalorder %s12000_s24, 5   ;;  %s13198_s18 = smov %s11926_s19 }
 0x399   : > { %s13199_s19 = smov %s11930_s20  ;;  %s13200_s20 = smov %s12012_s27 }
 0x39a   : > { %s13201_s21 = smov %s12000_s24  ;;  %20 = sbr.rel (!%p18_p8) target bundleno = 5 (0x5), region = 100 }
 0x39f   :  { %10328 = vsyncpa [#allocation3], 1 }
 0x3a0   :  { %10330 = vsyncpa [#allocation3 + $0x1], 1 }
 0x3a1   :  { %10331 = vsyncpa [#allocation4], 1 }
 0x3a2   :  { %10333 = vsyncpa [#allocation4 + $0x1], 1 }

</bundles_post_ra>
